<compile_context>
chip_gen: v6e
topology: v6e:2x2x1
jax: 0.10.0
libtpu: 0.0.40
codegen_flags: <defaults>
</compile_context>

<pallas_src>
import jax
import jax.numpy as jnp
import numpy as np
from jax.experimental import pallas as pl
from jax.experimental.pallas import tpu as pltpu

# --- synthetic "move" setup (deterministic, no checkpoint load) -------------
NUM_MOVES = 12       # e.g. quarter-turn metric move set
MATRIX_SIZE = 24     # S: size of each (permutation-like) move matrix
S2 = MATRIX_SIZE * MATRIX_SIZE
BATCH = 2

_TB_MAX = 1024       # (1024, 576) f32 output block = 2.25 MiB; 2x-buffered + table << scoped VMEM
_K_PAD = 128         # MXU path: pad K=12 -> 128 with zeros (exact)
_NEG_LOGIT = -1e30   # fused MXU path: padded logit columns -> exp underflows to exactly 0


def _build_move_matrices() -> jnp.ndarray:
    """Deterministic stand-in for torch.stack([move_matrix(m).view(-1) ...])."""
    eye = np.eye(MATRIX_SIZE, dtype=np.float32)
    mats = np.stack(
        [np.roll(eye, shift=(m + 1), axis=1).reshape(-1) for m in range(NUM_MOVES)],
        axis=0,
    )  # (NUM_MOVES, S*S)
    return jnp.asarray(mats)


# --- kernel bodies -----------------------------------------------------------
def _combine_vpu(probs, mats):
    """12-term broadcast-weighted sum on the VPU (v5e path).

    Split into two independent half-chains to cap live vregs (spill concern for
    a fully-unrolled 12-term chain) and give a little ILP.
    """
    half = NUM_MOVES // 2
    acc0 = probs[:, 0:1] * mats[0:1, :]
    for m in range(1, half):
        acc0 = acc0 + probs[:, m:m + 1] * mats[m:m + 1, :]
    acc1 = probs[:, half:half + 1] * mats[half:half + 1, :]
    for m in range(half + 1, NUM_MOVES):
        acc1 = acc1 + probs[:, m:m + 1] * mats[m:m + 1, :]
    return acc0 + acc1


def _combine_mxu(probs_padded, mats_padded):
    """K zero-padded to 128; exact f32 accumulation on the MXU (v6e/v7x path)."""
    return jnp.dot(probs_padded, mats_padded,
                   preferred_element_type=jnp.float32,
                   precision=jax.lax.Precision.HIGHEST)


def _softmax_rows(logits):
    mx = jnp.max(logits, axis=-1, keepdims=True)
    ex = jnp.exp(logits - mx)                                        # EUP slot
    inv = pl.reciprocal(jnp.sum(ex, axis=-1, keepdims=True), approx=True)  # EUP slot
    return ex * inv


def _combine_kernel_vpu(probs_ref, mats_ref, out_ref):
    out_ref[...] = _combine_vpu(probs_ref[...], mats_ref[...])


def _combine_kernel_mxu(probs_ref, mats_ref, out_ref):
    out_ref[...] = _combine_mxu(probs_ref[...], mats_ref[...])


def _fused_kernel_vpu(logits_ref, mats_ref, out_ref):
    out_ref[...] = _combine_vpu(_softmax_rows(logits_ref[...]), mats_ref[...])


def _fused_kernel_mxu(logits_ref, mats_ref, out_ref):
    # Padded logit columns hold _NEG_LOGIT, so exp underflows to exactly 0:
    # the 128-wide softmax equals the 12-wide one and padded K adds nothing.
    out_ref[...] = _combine_mxu(_softmax_rows(logits_ref[...]), mats_ref[...])


# --- wrappers ----------------------------------------------------------------
def _round_up(x: int, m: int) -> int:
    return (x + m - 1) // m * m


def _default_use_mxu() -> bool:
    try:
        kind = jax.devices()[0].device_kind.lower()
    except Exception:
        return True
    # v5e: the VPU chain already sits near its HBM write roofline and the v5e
    # MXU (f32 emulation, 197 TF/s) gives little margin -> keep the VALU path.
    if "v5 lite" in kind or "v5lite" in kind or "v5e" in kind:
        return False
    return True


def _launch(x: jnp.ndarray, matrices: jnp.ndarray, *, fused: bool, use_mxu: bool):
    """x: (B, NUM_MOVES) f32 (probs or logits) -> (B, S, S) f32."""
    b, k = x.shape
    s2 = matrices.shape[1]

    # Batch tile: multiple of 8 (sublanes), capped at _TB_MAX, and chosen so a
    # large batch always yields >= 2 grid steps for the v7x 2-TC "parallel" split.
    tb = min(_TB_MAX, _round_up(pl.cdiv(b, 2), 8))
    grid = pl.cdiv(b, tb)
    pb = grid * tb

    # Pad only the tiny probs/logits input up to whole tiles; the output keeps
    # its exact (B, S*S) shape — Pallas masks the ragged last block's stores,
    # so there is no out[:b] re-copy pass over the result.
    if pb != b:
        x = jnp.pad(x, ((0, pb - b), (0, 0)))

    if use_mxu:
        pad_val = _NEG_LOGIT if fused else 0.0
        x = jnp.pad(x, ((0, 0), (0, _K_PAD - k)), constant_values=pad_val)
        mats = jnp.pad(matrices, ((0, _K_PAD - k), (0, 0)))
        kernel = _fused_kernel_mxu if fused else _combine_kernel_mxu
    else:
        mats = matrices
        kernel = _fused_kernel_vpu if fused else _combine_kernel_vpu

    kp = x.shape[1]
    km = mats.shape[0]

    out = pl.pallas_call(
        kernel,
        out_shape=jax.ShapeDtypeStruct((b, s2), jnp.float32),
        grid_spec=pltpu.PrefetchScalarGridSpec(
            num_scalar_prefetch=0,
            grid=(grid,),
            in_specs=[
                pl.BlockSpec((tb, kp), lambda i: (i, 0)),
                # Constant block index: the (<= 288 KiB) move table is DMAed
                # into VMEM once and stays resident across all batch tiles.
                pl.BlockSpec((km, s2), lambda i: (0, 0)),
            ],
            out_specs=pl.BlockSpec((tb, s2), lambda i: (i, 0)),
        ),
        compiler_params=pltpu.CompilerParams(
            dimension_semantics=("parallel",),  # megacore / v7x 2-TC batch split
        ),
    )(x, mats)
    return out.reshape(-1, MATRIX_SIZE, MATRIX_SIZE)


def move_combiner_forward(probs, matrices, use_mxu=None):
    """Module-faithful forward: probs (B, NUM_MOVES) -> (B, S, S)."""
    if use_mxu is None:
        use_mxu = _default_use_mxu()
    return _launch(probs, matrices, fused=False, use_mxu=use_mxu)


def move_combiner_fused_forward(logits, matrices, use_mxu=None):
    """Fused softmax + combine: logits (B, NUM_MOVES) -> (B, S, S)."""
    if use_mxu is None:
        use_mxu = _default_use_mxu()
    return _launch(logits, matrices, fused=True, use_mxu=use_mxu)


if __name__ == "__main__":
    key = jax.random.PRNGKey(0)
    matrices = _build_move_matrices()                          # (12, 576)
    logits = jax.random.normal(key, (BATCH, NUM_MOVES), dtype=jnp.float32)
    probs = jax.nn.softmax(logits, axis=-1)                    # (2, 12)
    ref = (probs @ matrices).reshape(-1, MATRIX_SIZE, MATRIX_SIZE)

    # 1) module-faithful path (probs -> combined), chip-default compute path
    out = jax.block_until_ready(move_combiner_forward(probs, matrices))
    assert out.shape == (BATCH, MATRIX_SIZE, MATRIX_SIZE)
    np.testing.assert_allclose(np.asarray(out), np.asarray(ref), rtol=1e-5, atol=1e-5)

    # 2) fused path (softmax inside the kernel; approx reciprocal on the EUP
    #    -> slightly looser tolerance)
    fused = jax.block_until_ready(move_combiner_fused_forward(logits, matrices))
    np.testing.assert_allclose(np.asarray(fused), np.asarray(ref), rtol=2e-3, atol=2e-3)

    # 3) larger, non-tile-multiple batch exercises the ragged-edge output
    #    masking, the >=2-step parallel grid, and the VMEM-resident move table
    #    on BOTH compute paths (MXU dot and VPU chain).
    big_logits = jax.random.normal(jax.random.PRNGKey(1), (1000, NUM_MOVES), jnp.float32)
    big_probs = jax.nn.softmax(big_logits, axis=-1)
    big_ref = (big_probs @ matrices).reshape(-1, MATRIX_SIZE, MATRIX_SIZE)
    for use_mxu in (True, False):
        big_out = jax.block_until_ready(
            move_combiner_forward(big_probs, matrices, use_mxu=use_mxu))
        np.testing.assert_allclose(np.asarray(big_out), np.asarray(big_ref),
                                   rtol=1e-5, atol=1e-5)

    print("KERNEL_OK")
</pallas_src>

<mosaic_0001>
module attributes {stable_mosaic.version = 11 : i64} {
  func.func @_combine_kernel_mxu(%arg0: i32, %arg1: memref<8x128xf32, #tpu.memory_space<vmem>>, %arg2: memref<128x576xf32, #tpu.memory_space<vmem>>, %arg3: memref<8x576xf32, #tpu.memory_space<vmem>>) attributes {dimension_semantics = [#tpu.dimension_semantics<parallel>], iteration_bounds = array<i64: 1>, scalar_prefetch = 0 : i64, scratch_operands = 0 : i64, tpu.core_type = #tpu.core_type<tc>, window_params = [{transform_indices = @transform_0, window_bounds = array<i64: 8, 128>}, {pipeline_mode = #tpu.pipeline_mode<synchronous>, transform_indices = @transform_1, window_bounds = array<i64: 128, 576>}, {transform_indices = @transform_2, window_bounds = array<i64: 8, 576>}]} {
    %c0 = arith.constant 0 : index
    %c0_0 = arith.constant 0 : index
    %0 = vector.load %arg1[%c0, %c0_0] : memref<8x128xf32, #tpu.memory_space<vmem>>, vector<8x128xf32>
    %c0_1 = arith.constant 0 : index
    %c0_2 = arith.constant 0 : index
    %1 = vector.load %arg2[%c0_1, %c0_2] : memref<128x576xf32, #tpu.memory_space<vmem>>, vector<128x576xf32>
    %cst = arith.constant dense<0.000000e+00> : vector<8x576xf32>
    %2 = tpu.matmul %0, %1, %cst {dimension_numbers = #tpu.dot_dimension_numbers<[1], [0], [0], [1], [0, 0, 1, 1], [], []>, precision = #tpu.contract_precision<fp32>} : vector<8x128xf32>, vector<128x576xf32>, vector<8x576xf32> -> vector<8x576xf32>
    %c0_3 = arith.constant 0 : index
    %c0_4 = arith.constant 0 : index
    %3 = vector.load %arg3[%c0_3, %c0_4] : memref<8x576xf32, #tpu.memory_space<vmem>>, vector<8x576xf32>
    tpu.vector_store %arg3[%c0_3, %c0_4], %2 {strides = array<i32>} : memref<8x576xf32, #tpu.memory_space<vmem>>, vector<8x576xf32>,
    return
  }
  func.func @transform_0(%arg0: i32) -> (i32, i32) {
    %c0_i32 = arith.constant 0 : i32
    %c0_i32_0 = arith.constant 0 : i32
    return %arg0, %c0_i32 : i32, i32
  }
  func.func @transform_1(%arg0: i32) -> (i32, i32) {
    %c0_i32 = arith.constant 0 : i32
    %c0_i32_0 = arith.constant 0 : i32
    %c0_i32_1 = arith.constant 0 : i32
    return %c0_i32, %c0_i32_0 : i32, i32
  }
  func.func @transform_2(%arg0: i32) -> (i32, i32) {
    %c0_i32 = arith.constant 0 : i32
    %c0_i32_0 = arith.constant 0 : i32
    return %arg0, %c0_i32 : i32, i32
  }
}

</mosaic_0001>

<bundles_post_ra>
// kernel: tpu_custom_call.1
= control target key start
LH: loop header
LB: loop body
LE: loop exit
PB: predicated region body
PF: predicated region fallthrough
CT: control target
= control target key end

     0   :  { %7 = vsyncpa [#allocation3], 0  ;;  %v4653_v7 = vmov 0.0   ;;  %vm2876_vm0 = vmmov 0   ;;  %vm2511_vm1 = vcmask 517120   ;;  %s4635_s0 = inlined_call_operand.vmem [shape: f32[8,128], index: 0, kind: input, shape index: {}]   ;;  %s4636_s1 = inlined_call_operand.vmem [shape: f32[128,576], index: 1, kind: input, shape index: {}]   ;;  %s4637_s2 = inlined_call_operand.hbm [shape: f32[2,576], index: 2, kind: output, shape index: {}]  }
   0x1   :  { %v89_v0 = vld [vmem:[%s4636_s1 + $0x260] sm:$0xff]  ;;  %v88_v1 = vld [vmem:[%s4636_s1 + $0x258] sm:$0xff]  ;;  %v83_v5 = vld [vmem:[%s4636_s1 + $0x230] sm:$0xff]  ;;  %189 = vmatprep.mubr.f32.mxu0 %v4653_v7  ;;  %425 = vmatprep.mubr.f32.mxu1 %v4653_v7 }
   0x2   :  { %v2902_v2 = vand.u32 4294901760, %v89_v0  ;;  %v2904_v3 = vand.u32 4294901760, %v88_v1  ;;  %v84_v4 = vld [vmem:[%s4636_s1 + $0x238] sm:$0xff]  ;;  %v79_v6 = vld [vmem:[%s4636_s1 + $0x210] sm:$0xff]  ;;  %v2919_v9 = vand.u32 4294901760, %v83_v5  ;;  %v78_v11 = vld [vmem:[%s4636_s1 + $0x208] sm:$0xff] }
   0x3   :  { %v2917_v8 = vand.u32 4294901760, %v84_v4  ;;  %v2921_v10 = vand.u32 4294901760, %v79_v6  ;;  %v74_v12 = vld [vmem:[%s4636_s1 + $0x1e8] sm:$0xff]  ;;  %v73_v13 = vld [vmem:[%s4636_s1 + $0x1e0] sm:$0xff]  ;;  %v2933_v14 = vand.u32 4294901760, %v78_v11  ;;  %v2948_v19 = vld [vmem:[%s4636_s1 + $0x1b8] sm:$0xff] }
   0x4   :  { %94 = vmatprep.subr.mxu0 %v2902_v2  ;;  %v2935_v15 = vand.u32 4294901760, %v74_v12  ;;  %v2937_v16 = vand.u32 4294901760, %v73_v13  ;;  %v69_v17 = vld [vmem:[%s4636_s1 + $0x1c0] sm:$0xff]  ;;  %v2943_v18 = vsub.f32 %v89_v0, %v2902_v2  ;;  %v2953_v20 = vld [vmem:[%s4636_s1 + $0x198] sm:$0xff]  ;;  %v2959_v22 = vand.u32 4294901760, %v2948_v19  ;;  %v2970_v25 = vld [vmem:[%s4636_s1 + $0x190] sm:$0xff] }
   0x5   :  { %96 = vmatpush1.msra.mxu0 %v2904_v3  ;;  %v2956_v21 = vand.u32 4294901760, %v69_v17  ;;  %v2962_v23 = vsub.f32 %v88_v1, %v2904_v3  ;;  %v2965_v24 = vand.u32 4294901760, %v2953_v20  ;;  %v2975_v26 = vld [vmem:[%s4636_s1 + $0x170] sm:$0xff]  ;;  %v2980_v27 = vld [vmem:[%s4636_s1 + $0x168] sm:$0xff]  ;;  %v2985_v29 = vsub.f32 %v84_v4, %v2917_v8  ;;  %v3021_v41 = vld [vmem:[%s4636_s1 + $0x140] sm:$0xff] }
   0x6   :  { %4762 = vst [vmem:[#allocation5_spill] sm:$0xff] %v2943_v18  ;;  %98 = vmatprep.subr.mxu0 %v2917_v8  ;;  %v4650_v28 = vand.u32 4294901760, %v2943_v18  ;;  %v2988_v30 = vand.u32 4294901760, %v2970_v25  ;;  %v2991_v31 = vsub.f32 %v83_v5, %v2919_v9  ;;  %v2996_v32 = vld [vmem:[%s4636_s1 + $0x148] sm:$0xff]  ;;  %v3001_v34 = vand.u32 4294901760, %v2975_v26  ;;  %v3045_v50 = vld [vmem:[%s4636_s1 + $0x120] sm:$0xff] }
   0x7   :  { %100 = vmatpush1.msra.mxu0 %v2919_v9  ;;  %v4649_v33 = vand.u32 4294901760, %v2962_v23  ;;  %v3004_v35 = vsub.f32 %v79_v6, %v2921_v10  ;;  %v3007_v36 = vand.u32 4294901760, %v2980_v27  ;;  %v4648_v38 = vand.u32 4294901760, %v2985_v29  ;;  %v3058_v55 = vld [vmem:[%s4636_s1 + $0x118] sm:$0xff]  ;;  %v3085_v1 = vld [vmem:[%s4636_s1 + $0xf0] sm:$0xff] }
   0x8   :  { %4763 = vst [vmem:[#allocation6_spill] sm:$0xff] %v3001_v34  ;;  %102 = vmatprep.subr.mxu0 %v2921_v10  ;;  %v204_v37 = vsub.f32 %v2943_v18, %v4650_v28  ;;  %v4646_v39 = vand.u32 4294901760, %v2991_v31  ;;  %v3016_v40 = vsub.f32 %v78_v11, %v2933_v14  ;;  %v3029_v44 = vand.u32 4294901760, %v2996_v32  ;;  %v3070_v60 = vld [vmem:[%s4636_s1 + $0xf8] sm:$0xff] }
   0x9   :  { %4764 = vst [vmem:[#allocation7_spill] sm:$0xff] %v3007_v36  ;;  %104 = vmatpush1.msra.mxu0 %v2933_v14  ;;  %v210_v42 = vsub.f32 %v2962_v23, %v4649_v33  ;;  %v4645_v43 = vand.u32 4294901760, %v3004_v35  ;;  %v3032_v45 = vsub.f32 %v74_v12, %v2935_v15  ;;  %v216_v47 = vsub.f32 %v2985_v29, %v4648_v38  ;;  %v3099_v12 = vld [vmem:[%s4636_s1 + $0xd0] sm:$0xff] }
   0xa   :  { %4765 = vst [vmem:[#allocation8_spill] sm:$0xff] %v3029_v44  ;;  %106 = vmatprep.subr.mxu0 %v2935_v15  ;;  %v205_v46 = vand.u32 4294901760, %v204_v37  ;;  %v222_v48 = vsub.f32 %v2991_v31, %v4646_v39  ;;  %v4643_v49 = vand.u32 4294901760, %v3016_v40  ;;  %v3053_v54 = vand.u32 4294901760, %v3021_v41  ;;  %v3212_v38 = vld [vmem:[%s4636_s1 + $0x50] sm:$0xff] }
   0xb   :  { %108 = vmatpush1.msra.mxu0 %v2937_v16  ;;  %v211_v51 = vand.u32 4294901760, %v210_v42  ;;  %v228_v52 = vsub.f32 %v3004_v35, %v4645_v43  ;;  %v4641_v53 = vand.u32 4294901760, %v3032_v45  ;;  %v217_v56 = vand.u32 4294901760, %v216_v47 }
   0xc   :  { %4766 = vst [vmem:[#allocation9_spill] sm:$0xff] %v3053_v54  ;;  %110 = vmatprep.subr.mxu0 %v2956_v21  ;;  %206 = vmatprep.subr.mxu1 %v205_v46  ;;  %v223_v57 = vand.u32 4294901760, %v222_v48  ;;  %v234_v58 = vsub.f32 %v3016_v40, %v4643_v49  ;;  %v3065_v59 = vsub.f32 %v73_v13, %v2937_v16  ;;  %v3077_v63 = vand.u32 4294901760, %v3045_v50  ;;  %v3185_v49 = vld [vmem:[%s4636_s1 + $0x78] sm:$0xff] }
   0xd   :  { %112 = vmatpush1.msra.mxu0 %v2959_v22  ;;  %212 = vmatpush1.msra.mxu1 %v211_v51  ;;  %v229_v61 = vand.u32 4294901760, %v228_v52  ;;  %v240_v62 = vsub.f32 %v3032_v45, %v4641_v53  ;;  %v3080_v0 = vsub.f32 %v69_v17, %v2956_v21  ;;  %v3090_v6 = vand.u32 4294901760, %v3058_v55 }
   0xe   :  { %4767 = vst [vmem:[#allocation10_spill] sm:$0xff] %v3077_v63  ;;  %114 = vmatprep.subr.mxu0 %v2965_v24  ;;  %218 = vmatprep.subr.mxu1 %v217_v56  ;;  %v235_v4 = vand.u32 4294901760, %v234_v58  ;;  %v4640_v5 = vand.u32 4294901760, %v3065_v59  ;;  %v3094_v11 = vsub.f32 %v2948_v19, %v2959_v22  ;;  %v3104_v37 = vand.u32 4294901760, %v3070_v60  ;;  %v3113_v19 = vld [vmem:[%s4636_s1 + $0xc8] sm:$0xff] }
   0xf   :  { %4768 = vst [vmem:[#allocation11_spill] sm:$0xff] %v3090_v6  ;;  %116 = vmatpush1.msra.mxu0 %v2988_v30  ;;  %224 = vmatpush1.msra.mxu1 %v223_v57  ;;  %v241_v13 = vand.u32 4294901760, %v240_v62  ;;  %v4638_v17 = vand.u32 4294901760, %v3080_v0  ;;  %v3108_v42 = vsub.f32 %v2953_v20, %v2965_v24  ;;  %v3121_v48 = vand.u32 4294901760, %v3085_v1 }
  0x10   :  { %4769 = vst [vmem:[#allocation12_spill] sm:$0xff] %v3104_v37  ;;  %118 = vmatprep.subr.mxu0 %v3001_v34  ;;  %230 = vmatprep.subr.mxu1 %v229_v61  ;;  %v246_v46 = vsub.f32 %v3065_v59, %v4640_v5  ;;  %v4639_v47 = vand.u32 4294901760, %v3094_v11  ;;  %v3125_v20 = vsub.f32 %v2970_v25, %v2988_v30  ;;  %v3133_v56 = vand.u32 4294901760, %v3099_v12  ;;  %v3142_v25 = vld [vmem:[%s4636_s1 + $0xa8] sm:$0xff]  ;;  %v3169_v5 = vld [vmem:[%s4636_s1 + $0x80] sm:$0xff] }
  0x11   :  { %4770 = vst [vmem:[#allocation13_spill] sm:$0xff] %v3121_v48  ;;  %120 = vmatpush1.msra.mxu0 %v3007_v36  ;;  %236 = vmatpush1.msra.mxu1 %v235_v4  ;;  %v252_v51 = vsub.f32 %v3080_v0, %v4638_v17  ;;  %v4642_v52 = vand.u32 4294901760, %v3108_v42  ;;  %v3137_v57 = vsub.f32 %v2975_v26, %v3001_v34  ;;  %v3150_v4 = vand.u32 4294901760, %v3113_v19  ;;  %v3155_v26 = vld [vmem:[%s4636_s1 + $0xa0] sm:$0xff] }
  0x12   :  { %4771 = vst [vmem:[#allocation14_spill] sm:$0xff] %v3133_v56  ;;  %122 = vmatprep.subr.mxu0 %v3029_v44  ;;  %242 = vmatprep.subr.mxu1 %v241_v13  ;;  %v247_v58 = vand.u32 4294901760, %v246_v46  ;;  %v258_v61 = vsub.f32 %v3094_v11, %v4639_v47  ;;  %v4644_v62 = vand.u32 4294901760, %v3125_v20  ;;  %v3164_v47 = vsub.f32 %v2980_v27, %v3007_v36 }
  0x13   :  { %4772 = vst [vmem:[#allocation15_spill] sm:$0xff] %v3150_v4  ;;  %124 = vmatpush1.msra.mxu0 %v3053_v54  ;;  %v253_v17 = vand.u32 4294901760, %v252_v51  ;;  %v264_v13 = vsub.f32 %v3108_v42, %v4642_v52  ;;  %v4647_v46 = vand.u32 4294901760, %v3137_v57  ;;  %v3176_v52 = vand.u32 4294901760, %v3142_v25 }
  0x14   :  { %248 = vmatpush1.msra.mxu1 %v247_v58  ;;  %126 = vmatprep.subr.mxu0 %v3077_v63  ;;  %v259_v53 = vand.u32 4294901760, %v258_v61  ;;  %v270_v51 = vsub.f32 %v3125_v20, %v4644_v62  ;;  %v3180_v27 = vsub.f32 %v2996_v32, %v3029_v44  ;;  %v4651_v62 = vand.u32 4294901760, %v3164_v47  ;;  %v3198_v32 = vld [vmem:[%s4636_s1 + $0x58] sm:$0xff] }
  0x15   :  { %4773 = vst [vmem:[#allocation16_spill] sm:$0xff] %v3176_v52  ;;  %254 = vmatprep.subr.mxu1 %v253_v17  ;;  %128 = vmatpush1.msra.mxu0 %v3090_v6  ;;  %v265_v58 = vand.u32 4294901760, %v264_v13  ;;  %v276_v61 = vsub.f32 %v3137_v57, %v4647_v46  ;;  %v3193_v43 = vand.u32 4294901760, %v3155_v26  ;;  %v3204_v39 = vsub.f32 %v3021_v41, %v3053_v54 }
  0x16   :  { %260 = vmatpush1.msra.mxu1 %v259_v53  ;;  %130 = vmatprep.subr.mxu0 %v3104_v37  ;;  %v271_v17 = vand.u32 4294901760, %v270_v51  ;;  %v4652_v13 = vand.u32 4294901760, %v3180_v27  ;;  %v3207_v46 = vand.u32 4294901760, %v3169_v5  ;;  %v282_v51 = vsub.f32 %v3164_v47, %v4651_v62 }
  0x17   :  { %4774 = vst [vmem:[#allocation17_spill] sm:$0xff] %v3193_v43  ;;  %266 = vmatprep.subr.mxu1 %v265_v58  ;;  %132 = vmatpush1.msra.mxu0 %v3121_v48  ;;  %v277_v53 = vand.u32 4294901760, %v276_v61  ;;  %v3220_v41 = vsub.f32 %v3045_v50, %v3077_v63  ;;  %v3223_v33 = vand.u32 4294901760, %v3185_v49  ;;  %v3232_v28 = vsub.f32 %v3058_v55, %v3090_v6  ;;  %v3240_v50 = vld [vmem:[%s4636_s1 + $0x30] sm:$0xff]  ;;  %v3254_v61 = vld [vmem:[%s4636_s1 + $0x28] sm:$0xff] }
  0x18   :  { %4775 = vst [vmem:[#allocation18_spill] sm:$0xff] %v3207_v46  ;;  %272 = vmatpush1.msra.mxu1 %v271_v17  ;;  %134 = vmatprep.subr.mxu0 %v3133_v56  ;;  %v288_v58 = vsub.f32 %v3180_v27, %v4652_v13  ;;  %v3235_v62 = vand.u32 4294901760, %v3198_v32  ;;  %v283_v17 = vand.u32 4294901760, %v282_v51  ;;  %v3246_v7 = vsub.f32 %v3070_v60, %v3104_v37 }
  0x19   :  { %4776 = vst [vmem:[#allocation19_spill] sm:$0xff] %v3223_v33  ;;  %278 = vmatprep.subr.mxu1 %v277_v53  ;;  %136 = vmatpush1.msra.mxu0 %v3150_v4  ;;  %v3249_v55 = vand.u32 4294901760, %v3212_v38  ;;  %v4779_v6 = vand.u32 4294901760, %v3204_v39  ;;  %v4669_v13 = vand.u32 4294901760, %v3232_v28  ;;  %v3263_v60 = vsub.f32 %v3085_v1, %v3121_v48  ;;  %v3280_v1 = vld [vmem:[%s4636_s1 + $0x8] sm:$0xff] }
  0x1a   :  { %4777 = vst [vmem:[#allocation20_spill] sm:$0xff] %v3235_v62  ;;  %138 = vmatprep.subr.mxu0 %v3176_v52  ;;  %v289_v53 = vand.u32 4294901760, %v288_v58  ;;  %284 = vmatpush1.msra.mxu1 %v283_v17  ;;  %v4780_v37 = vand.u32 4294901760, %v3220_v41  ;;  %v3271_v58 = vand.u32 4294901760, %v3240_v50  ;;  %v3288_v48 = vand.u32 4294901760, %v3254_v61 }
  0x1b   :  { %4778 = vst [vmem:[#allocation21_spill] sm:$0xff] %v3249_v55  ;;  %v294_v51 = vsub.f32 %v3204_v39, %v4779_v6  ;;  %140 = vmatpush1.msra.mxu0 %v3193_v43  ;;  %v3275_v6 = vsub.f32 %v3099_v12, %v3133_v56  ;;  %v3293_v12 = vld [vmem:[%s4636_s1] sm:$0xff]  ;;  %v4782_v36 = vand.u32 4294901760, %v3263_v60  ;;  %v3309_v34 = vand.u32 4294901760, %v3280_v1 }
  0x1c   :  { %v300_v63 = vsub.f32 %v3220_v41, %v4780_v37  ;;  %290 = vmatprep.subr.mxu1 %v289_v53  ;;  %142 = vmatprep.subr.mxu0 %v3207_v46  ;;  %v306_v37 = vsub.f32 %v3232_v28, %v4669_v13  ;;  %v4781_v53 = vand.u32 4294901760, %v3246_v7  ;;  %v3302_v13 = vsub.f32 %v3113_v19, %v3150_v4  ;;  %v12_v19 = vld [vmem:[%s4635_s0] sm:$0xff] }
  0x1d   :  { %v295_v17 = vand.u32 4294901760, %v294_v51  ;;  %144 = vmatpush1.msra.mxu0 %v3223_v33  ;;  %v4678_v44 = vand.u32 4294901760, %v3275_v6  ;;  %v3324_v4 = vand.u32 4294901760, %v3293_v12 }
  0x1e   :  { %v301_v56 = vand.u32 4294901760, %v300_v63  ;;  %v312_v51 = vsub.f32 %v3246_v7, %v4781_v53  ;;  %v307_v54 = vand.u32 4294901760, %v306_v37  ;;  %146 = vmatprep.subr.mxu0 %v3235_v62  ;;  %v318_v63 = vsub.f32 %v3263_v60, %v4782_v36 }
  0x1f   :  { %296 = vmatpush1.msra.mxu1 %v295_v17  ;;  %v3313_v53 = vsub.f32 %v3142_v25, %v3176_v52  ;;  %148 = vmatpush1.msra.mxu0 %v3249_v55  ;;  %v324_v37 = vsub.f32 %v3275_v6, %v4678_v44  ;;  %v4679_v36 = vand.u32 4294901760, %v3302_v13  ;;  %v3344_v52 = vsub.f32 %v3185_v49, %v3223_v33 }
  0x20   :  { %302 = vmatprep.subr.mxu1 %v301_v56  ;;  %v313_v17 = vand.u32 4294901760, %v312_v51  ;;  %v319_v25 = vand.u32 4294901760, %v318_v63  ;;  %150 = vmatprep.subr.mxu0 %v3271_v58  ;;  %v3330_v56 = vsub.f32 %v3155_v26, %v3193_v43  ;;  %v3334_v51 = vsub.f32 %v3169_v5, %v3207_v46 }
  0x21   :  { %308 = vmatpush1.msra.mxu1 %v307_v54  ;;  %v325_v44 = vand.u32 4294901760, %v324_v37  ;;  %152 = vmatpush1.msra.mxu0 %v3288_v48  ;;  %v330_v54 = vsub.f32 %v3302_v13, %v4679_v36  ;;  %v3340_v63 = vand.u32 4294901760, %v12_v19  ;;  %v4784_v5 = vand.u32 4294901760, %v3313_v53 }
  0x22   :  { %314 = vmatprep.subr.mxu1 %v313_v17  ;;  %154 = vmatprep.subr.mxu0 %v3309_v34  ;;  %v3354_v36 = vsub.f32 %v3198_v32, %v3235_v62  ;;  %v4786_v37 = vand.u32 4294901760, %v3330_v56  ;;  %v4787_v32 = vand.u32 4294901760, %v3334_v51  ;;  %v3389_v62 = vsub.f32 %v3254_v61, %v3288_v48 }
  0x23   :  { %4783 = vst [vmem:[#allocation22_spill] sm:$0xff] %v3340_v63  ;;  %320 = vmatpush1.msra.mxu1 %v319_v25  ;;  %v336_v26 = vsub.f32 %v3313_v53, %v4784_v5  ;;  %v331_v46 = vand.u32 4294901760, %v330_v54  ;;  %156 = vmatpush1.msra.mxu0 %v3324_v4  ;;  %v3358_v49 = vsub.f32 %v12_v19, %v3340_v63  ;;  %v4688_v25 = vand.u32 4294901760, %v3344_v52 }
  0x24   :  { %326 = vmatprep.subr.mxu1 %v325_v44  ;;  %v3363_v5 = vsub.f32 %v3212_v38, %v3249_v55  ;;  %v342_v33 = vsub.f32 %v3330_v56, %v4786_v37  ;;  %v348_v44 = vsub.f32 %v3334_v51, %v4787_v32  ;;  %435 = vmatprep.subr.mxu0 %v2943_v18  ;;  %v4690_v19 = vand.u32 4294901760, %v3354_v36 }
  0x25   :  { %4785 = vst [vmem:[#allocation23_spill] sm:$0xff] %v3358_v49  ;;  %v337_v17 = vand.u32 4294901760, %v336_v26  ;;  %332 = vmatpush1.msra.mxu1 %v331_v46  ;;  %v3374_v54 = vand.u32 4294901760, %v3358_v49  ;;  %v354_v38 = vsub.f32 %v3344_v52, %v4688_v25  ;;  %v3382_v37 = vsub.f32 %v3240_v50, %v3271_v58  ;;  %4789 = vst [vmem:[#allocation25_spill] sm:$0xff] %v3389_v62 }
  0x26   :  { %v4693_v26 = vand.u32 4294901760, %v3363_v5  ;;  %v343_v32 = vand.u32 4294901760, %v342_v33  ;;  %v349_v55 = vand.u32 4294901760, %v348_v44  ;;  %v360_v46 = vsub.f32 %v3354_v36, %v4690_v19 }
  0x27   :  { %4788 = vst [vmem:[#allocation24_spill] sm:$0xff] %v3374_v54  ;;  %338 = vmatprep.subr.mxu1 %v337_v17  ;;  %v193_v25 = vsub.f32 %v3358_v49, %v3374_v54  ;;  %v355_v18 = vand.u32 4294901760, %v354_v38  ;;  %v4697_v17 = vand.u32 4294901760, %v3382_v37  ;;  %v4696_v44 = vand.u32 4294901760, %v3389_v62 }
  0x28   :  { %v366_v50 = vsub.f32 %v3363_v5, %v4693_v26  ;;  %344 = vmatpush1.msra.mxu1 %v343_v32  ;;  %v361_v33 = vand.u32 4294901760, %v360_v46  ;;  %v3400_v19 = vsub.f32 %v3280_v1, %v3309_v34  ;;  %v3404_v61 = vsub.f32 %v3293_v12, %v3324_v4 }
  0x29   :  { %350 = vmatprep.subr.mxu1 %v349_v55  ;;  %v3406_v38 = vand.u32 4294901760, %v193_v25  ;;  %v372_v26 = vsub.f32 %v3382_v37, %v4697_v17  ;;  %v378_v32 = vsub.f32 %v3389_v62, %v4696_v44  ;;  %v4803_v44 = vld [vmem:[#allocation16_spill] sm:$0xff]  ;;  %v4804_v17 = vld [vmem:[#allocation18_spill] sm:$0xff] }
  0x2a   :  { %4790 = vst [vmem:[#allocation26_spill] sm:$0xff] %v3404_v61  ;;  %v367_v54 = vand.u32 4294901760, %v366_v50  ;;  %356 = vmatpush1.msra.mxu1 %v355_v18  ;;  %v4695_v1 = vand.u32 4294901760, %v3400_v19  ;;  %v4694_v46 = vand.u32 4294901760, %v3404_v61 }
  0x2b   :  { %4791 = vst [vmem:[#allocation27_spill] sm:$0xff] %v3406_v38  ;;  %195 = vmatmul.mubr.f32.vlgmr.msra.gmra.mxu0 %v3406_v38  ;;  %362 = vmatprep.subr.mxu1 %v361_v33  ;;  %v373_v55 = vand.u32 4294901760, %v372_v26  ;;  %v379_v12 = vand.u32 4294901760, %v378_v32  ;;  %v4793_v33 = vld [vmem:[#allocation6_spill] sm:$0xff]  ;;  %v4794_v32 = vld [vmem:[#allocation7_spill] sm:$0xff]  ;;  %v4805_v38 = vld [vmem:[#allocation5_spill] sm:$0xff] }
  0x2c   :  { %438 = vmatpush1.msra.mxu0 %v2962_v23  ;;  %368 = vmatpush1.msra.mxu1 %v367_v54  ;;  %v384_v18 = vsub.f32 %v3400_v19, %v4695_v1  ;;  %v390_v25 = vsub.f32 %v3404_v61, %v4694_v46  ;;  %v4792_v54 = vmov 0.0   ;;  %v4801_v46 = vld [vmem:[#allocation14_spill] sm:$0xff]  ;;  %v4802_v1 = vld [vmem:[#allocation15_spill] sm:$0xff] }
  0x2d   :  { %441 = vmatprep.subr.mxu0 %v2985_v29  ;;  %374 = vmatprep.subr.mxu1 %v373_v55  ;;  %v4795_v55 = vld [vmem:[#allocation8_spill] sm:$0xff] }
  0x2e   :  { %444 = vmatpush1.msra.mxu0 %v2991_v31  ;;  %380 = vmatpush1.msra.mxu1 %v379_v12  ;;  %v385_v50 = vand.u32 4294901760, %v384_v18  ;;  %v391_v26 = vand.u32 4294901760, %v390_v25  ;;  %v4796_v12 = vld [vmem:[#allocation9_spill] sm:$0xff]  ;;  %v4797_v18 = vld [vmem:[#allocation10_spill] sm:$0xff]  ;;  %v4798_v25 = vld [vmem:[#allocation11_spill] sm:$0xff] }
  0x2f   :  { %447 = vmatprep.subr.mxu0 %v3004_v35  ;;  %561 = vmatprep.mubr.f32.mxu0 %v4792_v54 }
  0x30   :  { %450 = vmatpush1.msra.mxu0 %v3016_v40  ;;  %386 = vmatprep.subr.mxu1 %v385_v50  ;;  %v4799_v50 = vld [vmem:[#allocation12_spill] sm:$0xff] }
  0x31   :  { %453 = vmatprep.subr.mxu0 %v3032_v45  ;;  %392 = vmatpush1.msra.mxu1 %v391_v26  ;;  %v4800_v26 = vld [vmem:[#allocation13_spill] sm:$0xff] }
  0x32   :  { %456 = vmatpush1.msra.mxu0 %v3065_v59  ;;  %427 = vmatmul.mubr.f32.vlgmr.msra.gmra.mxu1 %v3340_v63  ;;  %v4806_v63 = vand.u32 4294901760, %v4805_v38  ;;  %v4813_v38 = vand.u32 4294901760, %v3004_v35  ;;  %v4818_v35 = vand.u32 4294901760, %v3080_v0 }
  0x33   :  { %459 = vmatprep.subr.mxu0 %v3080_v0  ;;  %571 = vmatprep.subr.mxu1 %v2902_v2  ;;  %v4822_v0 = vand.u32 4294901760, %v3137_v57 }
  0x34   :  { %462 = vmatpush1.msra.mxu0 %v3094_v11  ;;  %573 = vmatpush1.msra.mxu1 %v2904_v3 }
  0x35   :  { %465 = vmatprep.subr.mxu0 %v3108_v42  ;;  %575 = vmatprep.subr.mxu1 %v2917_v8 }
  0x36   :  { %468 = vmatpush1.msra.mxu0 %v3125_v20  ;;  %577 = vmatpush1.msra.mxu1 %v2919_v9 }
  0x37   :  { %471 = vmatprep.subr.mxu0 %v3137_v57  ;;  %579 = vmatprep.subr.mxu1 %v2921_v10 }
  0x38   :  { %474 = vmatpush1.msra.mxu0 %v3164_v47  ;;  %581 = vmatpush1.msra.mxu1 %v2933_v14 }
  0x39   :  { %477 = vmatprep.subr.mxu0 %v3180_v27  ;;  %583 = vmatprep.subr.mxu1 %v2935_v15 }
  0x3a   :  { %480 = vmatpush1.msra.mxu0 %v3204_v39  ;;  %585 = vmatpush1.msra.mxu1 %v2937_v16 }
  0x3b   :  { %483 = vmatprep.subr.mxu0 %v3220_v41  ;;  %587 = vmatprep.subr.mxu1 %v2956_v21 }
  0x3c   :  { %486 = vmatpush1.msra.mxu0 %v3232_v28  ;;  %589 = vmatpush1.msra.mxu1 %v2959_v22 }
  0x3d   :  { %489 = vmatprep.subr.mxu0 %v3246_v7  ;;  %591 = vmatprep.subr.mxu1 %v2965_v24 }
  0x3e   :  { %492 = vmatpush1.msra.mxu0 %v3263_v60  ;;  %593 = vmatpush1.msra.mxu1 %v2988_v30 }
  0x3f   :  { %495 = vmatprep.subr.mxu0 %v3275_v6  ;;  %595 = vmatprep.subr.mxu1 %v4793_v33 }
  0x40   :  { %498 = vmatpush1.msra.mxu0 %v3302_v13  ;;  %597 = vmatpush1.msra.mxu1 %v4794_v32 }
  0x41   :  { %501 = vmatprep.subr.mxu0 %v3313_v53  ;;  %599 = vmatprep.subr.mxu1 %v4795_v55 }
  0x42   :  { %504 = vmatpush1.msra.mxu0 %v3330_v56  ;;  %601 = vmatpush1.msra.mxu1 %v4796_v12 }
  0x43   :  { %507 = vmatprep.subr.mxu0 %v3334_v51  ;;  %603 = vmatprep.subr.mxu1 %v4797_v18 }
  0x44   :  { %510 = vmatpush1.msra.mxu0 %v3344_v52  ;;  %605 = vmatpush1.msra.mxu1 %v4798_v25 }
  0x45   :  { %513 = vmatprep.subr.mxu0 %v3354_v36  ;;  %607 = vmatprep.subr.mxu1 %v4799_v50 }
  0x46   :  { %516 = vmatpush1.msra.mxu0 %v3363_v5  ;;  %609 = vmatpush1.msra.mxu1 %v4800_v26 }
  0x47   :  { %519 = vmatprep.subr.mxu0 %v3382_v37  ;;  %611 = vmatprep.subr.mxu1 %v4801_v46  ;;  %v4807_v46 = vld [vmem:[#allocation19_spill] sm:$0xff] }
  0x48   :  { %522 = vmatpush1.msra.mxu0 %v3389_v62  ;;  %613 = vmatpush1.msra.mxu1 %v4802_v1  ;;  %v4808_v62 = vand.u32 4294901760, %v2962_v23  ;;  %v4809_v1 = vld [vmem:[#allocation20_spill] sm:$0xff]  ;;  %v4814_v23 = vand.u32 4294901760, %v3016_v40  ;;  %v4819_v40 = vand.u32 4294901760, %v3094_v11 }
  0x49   :  { %525 = vmatprep.subr.mxu0 %v3400_v19  ;;  %615 = vmatprep.subr.mxu1 %v4803_v44  ;;  %v4810_v44 = vand.u32 4294901760, %v2985_v29  ;;  %v4815_v29 = vand.u32 4294901760, %v3032_v45  ;;  %v4820_v45 = vand.u32 4294901760, %v3108_v42  ;;  %v86_v42 = vld [vmem:[%s4636_s1 + $0x248] sm:$0xff] }
  0x4a   :  { %528 = vmatpush1.msra.mxu0 %v3404_v61  ;;  %617 = vmatpush1.msra.mxu1 %v3193_v43  ;;  %v4811_v61 = vld [vmem:[#allocation21_spill] sm:$0xff]  ;;  %v4812_v43 = vand.u32 4294901760, %v2991_v31  ;;  %v4816_v31 = vand.u32 4294901760, %v3065_v59  ;;  %v4821_v59 = vand.u32 4294901760, %v3125_v20  ;;  %v4831_v20 = vand.u32 4294901760, %v3302_v13 }
  0x4b   :  { %564 = vmatmul.mubr.f32.vlgmr.msra.gmra.mxu0 %v3358_v49  ;;  %619 = vmatprep.subr.mxu1 %v4804_v17  ;;  %v3572_v57 = vand.u32 4294901760, %v86_v42  ;;  %v4833_v13 = vand.u32 4294901760, %v3330_v56  ;;  %v4835_v56 = vand.u32 4294901760, %v3344_v52  ;;  %v70_v52 = vld [vmem:[%s4636_s1 + $0x1c8] sm:$0xff] }
  0x4c   :  { %679 = vmatprep.subr.mxu0 %v4806_v63  ;;  %621 = vmatpush1.msra.mxu1 %v4807_v46  ;;  %v4834_v63 = vand.u32 4294901760, %v3334_v51  ;;  %v4837_v51 = vand.u32 4294901760, %v3354_v36  ;;  %v4839_v36 = vand.u32 4294901760, %v3363_v5  ;;  %v4842_v5 = vld [vmem:[#allocation14_spill] sm:$0xff] }
  0x4d   :  { %683 = vmatpush1.msra.mxu0 %v4808_v62  ;;  %623 = vmatprep.subr.mxu1 %v4809_v1 }
  0x4e   :  { %687 = vmatprep.subr.mxu0 %v4810_v44  ;;  %625 = vmatpush1.msra.mxu1 %v4811_v61 }
  0x4f   :  { %691 = vmatpush1.msra.mxu0 %v4812_v43  ;;  %627 = vmatprep.subr.mxu1 %v3271_v58  ;;  %v4817_v43 = vld [vmem:[#allocation24_spill] sm:$0xff] }
  0x50   :  { %695 = vmatprep.subr.mxu0 %v4813_v38  ;;  %629 = vmatpush1.msra.mxu1 %v3288_v48 }
  0x51   :  { %699 = vmatpush1.msra.mxu0 %v4814_v23  ;;  %631 = vmatprep.subr.mxu1 %v3309_v34  ;;  %v65_v23 = vld [vmem:[%s4636_s1 + $0x1a0] sm:$0xff] }
  0x52   :  { %703 = vmatprep.subr.mxu0 %v4815_v29  ;;  %633 = vmatpush1.msra.mxu1 %v3324_v4 }
  0x53   :  { %666 = vmatprep.mubr.f32.mxu1 %v4792_v54  ;;  %707 = vmatpush1.msra.mxu0 %v4816_v31  ;;  %v4840_v31 = vand.u32 4294901760, %v3382_v37 }
  0x54   :  { %670 = vmatmul.mubr.f32.vlgmr.msra.gmra.mxu1 %v4817_v43  ;;  %711 = vmatprep.subr.mxu0 %v4818_v35 }
  0x55   :  { %845 = vmatprep.subr.mxu1 %v2902_v2  ;;  %715 = vmatpush1.msra.mxu0 %v4819_v40  ;;  %v4823_v2 = vand.u32 4294901760, %v3164_v47  ;;  %v66_v40 = vld [vmem:[%s4636_s1 + $0x1a8] sm:$0xff] }
  0x56   :  { %847 = vmatpush1.msra.mxu1 %v2904_v3  ;;  %719 = vmatprep.subr.mxu0 %v4820_v45  ;;  %v4824_v3 = vand.u32 4294901760, %v3180_v27  ;;  %v4843_v45 = vld [vmem:[#allocation25_spill] sm:$0xff] }
  0x57   :  { %849 = vmatprep.subr.mxu1 %v2917_v8  ;;  %723 = vmatpush1.msra.mxu0 %v4821_v59  ;;  %v4825_v8 = vand.u32 4294901760, %v3204_v39  ;;  %v85_v39 = vld [vmem:[%s4636_s1 + $0x240] sm:$0xff]  ;;  %v4844_v59 = vand.u32 4294901760, %v4843_v45 }
  0x58   :  { %851 = vmatpush1.msra.mxu1 %v2919_v9  ;;  %727 = vmatprep.subr.mxu0 %v4822_v0  ;;  %v90_v9 = vld [vmem:[%s4636_s1 + $0x268] sm:$0xff]  ;;  %v3564_v47 = vand.u32 4294901760, %v85_v39 }
  0x59   :  { %853 = vmatprep.subr.mxu1 %v2921_v10  ;;  %731 = vmatpush1.msra.mxu0 %v4823_v2  ;;  %v4826_v10 = vand.u32 4294901760, %v3220_v41  ;;  %v3548_v11 = vand.u32 4294901760, %v90_v9  ;;  %v75_v41 = vld [vmem:[%s4636_s1 + $0x1f0] sm:$0xff]  ;;  %v3653_v2 = vand.u32 4294901760, %v65_v23 }
  0x5a   :  { %855 = vmatpush1.msra.mxu1 %v2933_v14  ;;  %735 = vmatprep.subr.mxu0 %v4824_v3  ;;  %v91_v14 = vld [vmem:[%s4636_s1 + $0x270] sm:$0xff]  ;;  %v3600_v44 = vsub.f32 %v85_v39, %v3564_v47  ;;  %v61_v3 = vld [vmem:[%s4636_s1 + $0x180] sm:$0xff] }
  0x5b   :  { %857 = vmatprep.subr.mxu1 %v2935_v15  ;;  %739 = vmatpush1.msra.mxu0 %v4825_v8  ;;  %v4827_v15 = vand.u32 4294901760, %v3232_v28  ;;  %v3556_v28 = vand.u32 4294901760, %v91_v14  ;;  %v3578_v62 = vsub.f32 %v90_v9, %v3548_v11  ;;  %4846 = vst [vmem:[#allocation10_spill] sm:$0xff] %v3653_v2  ;;  %v60_v8 = vld [vmem:[%s4636_s1 + $0x178] sm:$0xff] }
  0x5c   :  { %859 = vmatpush1.msra.mxu1 %v2937_v16  ;;  %743 = vmatprep.subr.mxu0 %v4826_v10  ;;  %v4828_v16 = vand.u32 4294901760, %v3246_v7  ;;  %v4830_v7 = vand.u32 4294901760, %v3275_v6  ;;  %v76_v6 = vld [vmem:[%s4636_s1 + $0x1f8] sm:$0xff]  ;;  %v4848_v10 = vand.u32 4294901760, %v3400_v19 }
  0x5d   :  { %861 = vmatprep.subr.mxu1 %v2956_v21  ;;  %747 = vmatpush1.msra.mxu0 %v4827_v15  ;;  %v4829_v21 = vand.u32 4294901760, %v3263_v60  ;;  %v4710_v38 = vand.u32 4294901760, %v3578_v62  ;;  %v4847_v9 = vld [vmem:[#allocation15_spill] sm:$0xff] }
  0x5e   :  { %863 = vmatpush1.msra.mxu1 %v2959_v22  ;;  %751 = vmatprep.subr.mxu0 %v4828_v16  ;;  %v80_v22 = vld [vmem:[%s4636_s1 + $0x218] sm:$0xff]  ;;  %v4849_v16 = vld [vmem:[#allocation16_spill] sm:$0xff] }
  0x5f   :  { %865 = vmatprep.subr.mxu1 %v2965_v24  ;;  %755 = vmatpush1.msra.mxu0 %v4829_v21  ;;  %v81_v24 = vld [vmem:[%s4636_s1 + $0x220] sm:$0xff]  ;;  %v3580_v27 = vand.u32 4294901760, %v80_v22 }
  0x60   :  { %867 = vmatpush1.msra.mxu1 %v2988_v30  ;;  %759 = vmatprep.subr.mxu0 %v4830_v7  ;;  %v4832_v30 = vand.u32 4294901760, %v3313_v53  ;;  %v3588_v60 = vand.u32 4294901760, %v81_v24  ;;  %v3594_v53 = vsub.f32 %v91_v14, %v3556_v28  ;;  %v3667_v14 = vsub.f32 %v3578_v62, %v4710_v38 }
  0x61   :  { %869 = vmatprep.subr.mxu1 %v4793_v33  ;;  %763 = vmatpush1.msra.mxu0 %v4831_v20  ;;  %v3605_v33 = vand.u32 4294901760, %v75_v41  ;;  %v4853_v20 = vld [vmem:[#allocation17_spill] sm:$0xff] }
  0x62   :  { %871 = vmatpush1.msra.mxu1 %v4794_v32  ;;  %767 = vmatprep.subr.mxu0 %v4832_v30  ;;  %v71_v32 = vld [vmem:[%s4636_s1 + $0x1d0] sm:$0xff]  ;;  %v3633_v29 = vsub.f32 %v81_v24, %v3588_v60 }
  0x63   :  { %873 = vmatprep.subr.mxu1 %v4795_v55  ;;  %771 = vmatpush1.msra.mxu0 %v4833_v13  ;;  %4836 = vst [vmem:[#allocation6_spill] sm:$0xff] %v3605_v33  ;;  %v3611_v55 = vsub.f32 %v86_v42, %v3572_v57  ;;  %v3638_v35 = vand.u32 4294901760, %v71_v32  ;;  %v3648_v0 = vsub.f32 %v75_v41, %v3605_v33  ;;  %v4850_v42 = vld [vmem:[#allocation26_spill] sm:$0xff]  ;;  %v3694_v41 = vand.u32 4294901760, %v61_v3 }
  0x64   :  { %875 = vmatpush1.msra.mxu1 %v4796_v12  ;;  %775 = vmatprep.subr.mxu0 %v4834_v63  ;;  %v3617_v12 = vsub.f32 %v80_v22, %v3580_v27  ;;  %v4851_v21 = vand.u32 4294901760, %v4850_v42  ;;  %v3681_v22 = vand.u32 4294901760, %v66_v40  ;;  %v4707_v7 = vand.u32 4294901760, %v3633_v29  ;;  %v55_v24 = vld [vmem:[%s4636_s1 + $0x150] sm:$0xff] }
  0x65   :  { %877 = vmatprep.subr.mxu1 %v4797_v18  ;;  %779 = vmatpush1.msra.mxu0 %v4835_v56  ;;  %v3619_v18 = vand.u32 4294901760, %v76_v6  ;;  %4841 = vst [vmem:[#allocation8_spill] sm:$0xff] %v3638_v35  ;;  %v4709_v37 = vand.u32 4294901760, %v3611_v55  ;;  %4854 = vst [vmem:[#allocation12_spill] sm:$0xff] %v3694_v41  ;;  %v3696_v13 = vand.u32 4294901760, %v60_v8  ;;  %v3702_v63 = vsub.f32 %v71_v32, %v3638_v35  ;;  %v4856_v56 = vld [vmem:[#allocation22_spill] sm:$0xff] }
  0x66   :  { %879 = vmatpush1.msra.mxu1 %v4798_v25  ;;  %783 = vmatprep.subr.mxu0 %v4837_v51  ;;  %v4712_v25 = vand.u32 4294901760, %v3594_v53  ;;  %v4705_v15 = vand.u32 4294901760, %v3617_v12  ;;  %4852 = vst [vmem:[#allocation11_spill] sm:$0xff] %v3681_v22  ;;  %v3727_v45 = vand.u32 4294901760, %v55_v24  ;;  %v51_v42 = vld [vmem:[%s4636_s1 + $0x130] sm:$0xff]  ;;  %v30_v32 = vld [vmem:[%s4636_s1 + $0x88] sm:$0xff] }
  0x67   :  { %4838 = vst [vmem:[#allocation7_spill] sm:$0xff] %v3619_v18  ;;  %881 = vmatprep.subr.mxu1 %v4799_v50  ;;  %787 = vmatpush1.msra.mxu0 %v4839_v36  ;;  %v4708_v50 = vand.u32 4294901760, %v3600_v44  ;;  %v3671_v39 = vsub.f32 %v76_v6, %v3619_v18  ;;  %4855 = vst [vmem:[#allocation13_spill] sm:$0xff] %v3696_v13  ;;  %v56_v6 = vld [vmem:[%s4636_s1 + $0x158] sm:$0xff]  ;;  %v3712_v36 = vsub.f32 %v3611_v55, %v4709_v37 }
  0x68   :  { %883 = vmatpush1.msra.mxu1 %v4800_v26  ;;  %791 = vmatprep.subr.mxu0 %v4840_v31  ;;  %v3650_v26 = vand.u32 4294901760, %v70_v52  ;;  %v3679_v19 = vsub.f32 %v3594_v53, %v4712_v25  ;;  %v3715_v31 = vsub.f32 %v65_v23, %v3653_v2  ;;  %4857 = vst [vmem:[#allocation18_spill] sm:$0xff] %v3727_v45  ;;  %v50_v23 = vld [vmem:[%s4636_s1 + $0x128] sm:$0xff]  ;;  %v3790_v37 = vand.u32 4294901760, %v51_v42 }
  0x69   :  { %885 = vmatprep.subr.mxu1 %v4842_v5  ;;  %795 = vmatpush1.msra.mxu0 %v4844_v59  ;;  %v3692_v30 = vsub.f32 %v3600_v44, %v4708_v50  ;;  %v4706_v5 = vand.u32 4294901760, %v3648_v0  ;;  %v3738_v59 = vsub.f32 %v3633_v29, %v4707_v7 }
  0x6a   :  { %4845 = vst [vmem:[#allocation9_spill] sm:$0xff] %v3650_v26  ;;  %887 = vmatpush1.msra.mxu1 %v4847_v9  ;;  %799 = vmatprep.subr.mxu0 %v4848_v10  ;;  %v3707_v51 = vsub.f32 %v70_v52, %v3650_v26  ;;  %v4711_v52 = vand.u32 4294901760, %v3671_v39  ;;  %v3740_v9 = vand.u32 4294901760, %v56_v6  ;;  %v3743_v10 = vsub.f32 %v66_v40, %v3681_v22  ;;  %v45_v40 = vld [vmem:[%s4636_s1 + $0x100] sm:$0xff] }
  0x6b   :  { %889 = vmatprep.subr.mxu1 %v4849_v16  ;;  %803 = vmatpush1.msra.mxu0 %v4851_v21  ;;  %v4713_v21 = vand.u32 4294901760, %v3702_v63  ;;  %v4715_v7 = vand.u32 4294901760, %v3715_v31  ;;  %v1084_v50 = vand.u32 4294901760, %v3738_v59  ;;  %4861 = vst [vmem:[#allocation21_spill] sm:$0xff] %v3790_v37  ;;  %v3793_v38 = vand.u32 4294901760, %v45_v40  ;;  %v41_v59 = vld [vmem:[%s4636_s1 + $0xe0] sm:$0xff] }
  0x6c   :  { %836 = vmatprep.mubr.f32.mxu0 %v4792_v54  ;;  %891 = vmatpush1.msra.mxu1 %v4853_v20  ;;  %4858 = vst [vmem:[#allocation5_spill] sm:$0xff] %v3740_v9  ;;  %v3769_v20 = vand.u32 4294901760, %v50_v23  ;;  %v3855_v49 = vsub.f32 %v51_v42, %v3790_v37 }
  0x6d   :  { %838 = vmatmul.mubr.f32.vlgmr.msra.gmra.mxu0 %v4856_v56  ;;  %893 = vmatprep.subr.mxu1 %v4804_v17  ;;  %v3724_v17 = vsub.f32 %v3617_v12, %v4705_v15  ;;  %v4714_v15 = vand.u32 4294901760, %v3707_v51  ;;  %4862 = vst [vmem:[#allocation14_spill] sm:$0xff] %v3793_v38  ;;  %v3850_v43 = vsub.f32 %v45_v40, %v3793_v38 }
  0x6e   :  { %949 = vmatprep.subr.mxu0 %v3556_v28  ;;  %895 = vmatpush1.msra.mxu1 %v4807_v46  ;;  %v1060_v46 = vand.u32 4294901760, %v3679_v19  ;;  %v3759_v19 = vsub.f32 %v61_v3, %v3694_v41  ;;  %4859 = vst [vmem:[#allocation19_spill] sm:$0xff] %v3769_v20  ;;  %v46_v3 = vld [vmem:[%s4636_s1 + $0x108] sm:$0xff]  ;;  %4867 = vst [vmem:[#allocation17_spill] sm:$0xff] %v3855_v49 }
  0x6f   :  { %951 = vmatpush1.msra.mxu0 %v3548_v11  ;;  %897 = vmatprep.subr.mxu1 %v4809_v1  ;;  %v3749_v1 = vsub.f32 %v60_v8, %v3696_v13  ;;  %v3767_v8 = vsub.f32 %v3648_v0, %v4706_v5  ;;  %v3784_v5 = vsub.f32 %v55_v24, %v3727_v45  ;;  %v3805_v24 = vand.u32 4294901760, %v46_v3 }
  0x70   :  { %953 = vmatprep.subr.mxu0 %v3572_v57  ;;  %899 = vmatpush1.msra.mxu1 %v4811_v61  ;;  %v1072_v61 = vand.u32 4294901760, %v3712_v36  ;;  %v3781_v36 = vsub.f32 %v3671_v39, %v4711_v52  ;;  %v40_v52 = vld [vmem:[%s4636_s1 + $0xd8] sm:$0xff]  ;;  %v3823_v16 = vsub.f32 %v3707_v51, %v4714_v15 }
  0x71   :  { %955 = vmatpush1.msra.mxu0 %v3564_v47  ;;  %901 = vmatprep.subr.mxu1 %v3271_v58  ;;  %4860 = vst [vmem:[#allocation20_spill] sm:$0xff] %v3784_v5  ;;  %4863 = vst [vmem:[#allocation25_spill] sm:$0xff] %v3805_v24  ;;  %v3812_v58 = vsub.f32 %v56_v6, %v3740_v9  ;;  %v35_v6 = vld [vmem:[%s4636_s1 + $0xb0] sm:$0xff]  ;;  %v3837_v25 = vand.u32 4294901760, %v40_v52  ;;  %v36_v15 = vld [vmem:[%s4636_s1 + $0xb8] sm:$0xff] }
  0x72   :  { %957 = vmatprep.subr.mxu0 %v3588_v60  ;;  %903 = vmatpush1.msra.mxu1 %v3288_v48  ;;  %v4718_v48 = vand.u32 4294901760, %v3743_v10  ;;  %v3870_v42 = vand.u32 4294901760, %v35_v6 }
  0x73   :  { %959 = vmatpush1.msra.mxu0 %v3580_v27  ;;  %905 = vmatprep.subr.mxu1 %v3309_v34  ;;  %v3803_v34 = vsub.f32 %v3702_v63, %v4713_v21  ;;  %4864 = vst [vmem:[#allocation15_spill] sm:$0xff] %v3812_v58  ;;  %v3818_v21 = vsub.f32 %v50_v23, %v3769_v20  ;;  %4865 = vst [vmem:[#allocation16_spill] sm:$0xff] %v3837_v25 }
  0x74   :  { %961 = vmatprep.subr.mxu0 %v3619_v18  ;;  %907 = vmatpush1.msra.mxu1 %v3324_v4  ;;  %v1102_v4 = vand.u32 4294901760, %v3767_v8  ;;  %v1096_v8 = vand.u32 4294901760, %v3781_v36  ;;  %v3835_v23 = vsub.f32 %v3715_v31, %v4715_v7  ;;  %v3847_v36 = vsub.f32 %v3743_v10, %v4718_v48  ;;  %4870 = vst [vmem:[#allocation28_spill] sm:$0xff] %v3870_v42 }
  0x75   :  { %940 = vmatprep.mubr.f32.mxu1 %v4792_v54  ;;  %963 = vmatpush1.msra.mxu0 %v3605_v33  ;;  %v3852_v7 = vand.u32 4294901760, %v41_v59  ;;  %v1108_v48 = vand.u32 4294901760, %v3803_v34  ;;  %v31_v33 = vld [vmem:[%s4636_s1 + $0x90] sm:$0xff]  ;;  %v4871_v34 = vand.u32 4294901760, %v3749_v1  ;;  %v3899_v18 = vand.u32 4294901760, %v30_v32 }
  0x76   :  { %942 = vmatmul.mubr.f32.vlgmr.msra.gmra.mxu1 %v4856_v56  ;;  %965 = vmatprep.subr.mxu0 %v3638_v35  ;;  %v3885_v35 = vsub.f32 %v46_v3, %v3805_v24  ;;  %v26_v3 = vld [vmem:[%s4636_s1 + $0x68] sm:$0xff] }
  0x77   :  { %1061 = vmatprep.subr.mxu1 %v1060_v46  ;;  %967 = vmatpush1.msra.mxu0 %v3650_v26  ;;  %4866 = vst [vmem:[#allocation26_spill] sm:$0xff] %v3852_v7  ;;  %v4868_v46 = vand.u32 4294901760, %v3667_v14  ;;  %v4869_v26 = vand.u32 4294901760, %v3759_v19  ;;  %v1114_v14 = vand.u32 4294901760, %v3823_v16  ;;  %v4873_v16 = vand.u32 4294901760, %v3784_v5 }
  0x78   :  { %969 = vmatprep.subr.mxu0 %v3681_v22  ;;  %v4872_v22 = vand.u32 4294901760, %v3692_v30  ;;  %v3906_v30 = vand.u32 4294901760, %v31_v33  ;;  %1044 = vmatprep.mubr.f32.mxu0 %v4792_v54 }
  0x79   :  { %1067 = vmatpush1.msra.mxu1 %v4868_v46  ;;  %v3867_v40 = vsub.f32 %v3759_v19, %v4869_v26  ;;  %971 = vmatpush1.msra.mxu0 %v3653_v2  ;;  %v3880_v46 = vsub.f32 %v3749_v1, %v4871_v34  ;;  %v3882_v26 = vand.u32 4294901760, %v36_v15  ;;  %v3892_v2 = vsub.f32 %v40_v52, %v3837_v25 }
  0x7a   :  { %1073 = vmatprep.subr.mxu1 %v1072_v61  ;;  %973 = vmatprep.subr.mxu0 %v3694_v41  ;;  %v1126_v61 = vand.u32 4294901760, %v3835_v23  ;;  %v3897_v34 = vsub.f32 %v3784_v5, %v4873_v16  ;;  %v25_v23 = vld [vmem:[%s4636_s1 + $0x60] sm:$0xff]  ;;  %v3913_v16 = vsub.f32 %v41_v59, %v3852_v7  ;;  %v4874_v41 = vand.u32 4294901760, %v3724_v17 }
  0x7b   :  { %1079 = vmatpush1.msra.mxu1 %v4872_v22  ;;  %975 = vmatpush1.msra.mxu0 %v3696_v13  ;;  %v1120_v22 = vand.u32 4294901760, %v3847_v36  ;;  %v4875_v36 = vand.u32 4294901760, %v3812_v58  ;;  %v3923_v52 = vsub.f32 %v35_v6, %v3870_v42  ;;  %v21_v59 = vld [vmem:[%s4636_s1 + $0x40] sm:$0xff]  ;;  %v3931_v17 = vand.u32 4294901760, %v26_v3  ;;  %v20_v6 = vld [vmem:[%s4636_s1 + $0x38] sm:$0xff] }
  0x7c   :  { %1085 = vmatprep.subr.mxu1 %v1084_v50  ;;  %977 = vmatprep.subr.mxu0 %v3740_v9  ;;  %v1132_v50 = vand.u32 4294901760, %v3867_v40  ;;  %v3943_v5 = vsub.f32 %v30_v32, %v3899_v18  ;;  %v16_v40 = vld [vmem:[%s4636_s1 + $0x18] sm:$0xff]  ;;  %v4879_v32 = vand.u32 4294901760, %v3885_v35 }
  0x7d   :  { %1091 = vmatpush1.msra.mxu1 %v4874_v41  ;;  %v1143_v13 = vsub.f32 %v3812_v58, %v4875_v36  ;;  %4876 = vst [vmem:[#allocation29_spill] sm:$0xff] %v3923_v52  ;;  %979 = vmatpush1.msra.mxu0 %v3727_v45  ;;  %v1138_v41 = vand.u32 4294901760, %v3880_v46  ;;  %v3938_v36 = vsub.f32 %v36_v15, %v3882_v26  ;;  %v3945_v46 = vand.u32 4294901760, %v25_v23 }
  0x7e   :  { %1097 = vmatprep.subr.mxu1 %v1096_v8  ;;  %981 = vmatprep.subr.mxu0 %v3790_v37  ;;  %v1150_v8 = vand.u32 4294901760, %v3897_v34  ;;  %v4877_v15 = vand.u32 4294901760, %v3855_v49  ;;  %v3955_v37 = vand.u32 4294901760, %v21_v59  ;;  %v15_v34 = vld [vmem:[%s4636_s1 + $0x10] sm:$0xff]  ;;  %v3962_v45 = vsub.f32 %v31_v33, %v3906_v30 }
  0x7f   :  { %1103 = vmatpush1.msra.mxu1 %v1102_v4  ;;  %983 = vmatpush1.msra.mxu0 %v3769_v20  ;;  %v4878_v20 = vand.u32 4294901760, %v3818_v21  ;;  %v1167_v33 = vsub.f32 %v3885_v35, %v4879_v32  ;;  %v3975_v58 = vand.u32 4294901760, %v16_v40 }
  0x80   :  { %1109 = vmatprep.subr.mxu1 %v1108_v48  ;;  %v1155_v4 = vsub.f32 %v3855_v49, %v4877_v15  ;;  %985 = vmatprep.subr.mxu0 %v3805_v24  ;;  %v1144_v48 = vand.u32 4294901760, %v1143_v13  ;;  %v3968_v15 = vand.u32 4294901760, %v20_v6  ;;  %v3979_v13 = vsub.f32 %v26_v3, %v3931_v17 }
  0x81   :  { %1115 = vmatpush1.msra.mxu1 %v1114_v14  ;;  %v1161_v9 = vsub.f32 %v3818_v21, %v4878_v20  ;;  %987 = vmatpush1.msra.mxu0 %v3793_v38  ;;  %v3983_v20 = vsub.f32 %v25_v23, %v3945_v46  ;;  %v3988_v38 = vand.u32 4294901760, %v15_v34  ;;  %v4882_v3 = vand.u32 4294901760, %v3913_v16 }
  0x82   :  { %1121 = vmatprep.subr.mxu1 %v1120_v22  ;;  %989 = vmatprep.subr.mxu0 %v3852_v7  ;;  %v4881_v22 = vand.u32 4294901760, %v3850_v43  ;;  %v1156_v14 = vand.u32 4294901760, %v1155_v4  ;;  %v3997_v23 = vsub.f32 %v21_v59, %v3955_v37  ;;  %v4001_v24 = vsub.f32 %v20_v6, %v3968_v15 }
  0x83   :  { %1127 = vmatpush1.msra.mxu1 %v1126_v61  ;;  %4880 = vst [vmem:[#allocation30_spill] sm:$0xff] %v3983_v20  ;;  %991 = vmatpush1.msra.mxu0 %v3837_v25  ;;  %v1179_v61 = vsub.f32 %v3913_v16, %v4882_v3  ;;  %v1168_v3 = vand.u32 4294901760, %v1167_v33  ;;  %v4884_v59 = vand.u32 4294901760, %v3938_v36 }
  0x84   :  { %v1173_v49 = vsub.f32 %v3850_v43, %v4881_v22  ;;  %1133 = vmatprep.subr.mxu1 %v1132_v50  ;;  %993 = vmatprep.subr.mxu0 %v3882_v26  ;;  %v1162_v22 = vand.u32 4294901760, %v1161_v9  ;;  %v4883_v50 = vand.u32 4294901760, %v3892_v2  ;;  %v4013_v9 = vsub.f32 %v16_v40, %v3975_v58 }
  0x85   :  { %1139 = vmatpush1.msra.mxu1 %v1138_v41  ;;  %995 = vmatpush1.msra.mxu0 %v3870_v42  ;;  %v1191_v41 = vsub.f32 %v3938_v36, %v4884_v59  ;;  %v1180_v59 = vand.u32 4294901760, %v1179_v61  ;;  %v4887_v40 = vand.u32 4294901760, %v3962_v45  ;;  %v4889_v61 = vand.u32 4294901760, %v3979_v13 }
  0x86   :  { %v1185_v4 = vsub.f32 %v3892_v2, %v4883_v50  ;;  %1145 = vmatprep.subr.mxu1 %v1144_v48  ;;  %997 = vmatprep.subr.mxu0 %v3906_v30  ;;  %v1174_v6 = vand.u32 4294901760, %v1173_v49  ;;  %v4017_v50 = vsub.f32 %v15_v34, %v3988_v38  ;;  %v4886_v48 = vand.u32 4294901760, %v3923_v52 }
  0x87   :  { %1151 = vmatpush1.msra.mxu1 %v1150_v8  ;;  %999 = vmatpush1.msra.mxu0 %v3899_v18  ;;  %v1203_v8 = vsub.f32 %v3962_v45, %v4887_v40  ;;  %v4888_v34 = vand.u32 4294901760, %v3943_v5  ;;  %v1215_v40 = vsub.f32 %v3979_v13, %v4889_v61 }
  0x88   :  { %4885 = vst [vmem:[#allocation31_spill] sm:$0xff] %v4017_v50  ;;  %v1197_v33 = vsub.f32 %v3923_v52, %v4886_v48  ;;  %1157 = vmatprep.subr.mxu1 %v1156_v14  ;;  %1001 = vmatprep.subr.mxu0 %v3931_v17  ;;  %v1186_v49 = vand.u32 4294901760, %v1185_v4  ;;  %v1192_v14 = vand.u32 4294901760, %v1191_v41  ;;  %v4890_v4 = vand.u32 4294901760, %v3983_v20 }
  0x89   :  { %1163 = vmatpush1.msra.mxu1 %v1162_v22  ;;  %v1209_v48 = vsub.f32 %v3943_v5, %v4888_v34  ;;  %1003 = vmatpush1.msra.mxu0 %v3945_v46  ;;  %v4755_v32 = vand.u32 4294901760, %v4017_v50  ;;  %v4891_v41 = vand.u32 4294901760, %v3997_v23 }
  0x8a   :  { %1169 = vmatprep.subr.mxu1 %v1168_v3  ;;  %1005 = vmatprep.subr.mxu0 %v3955_v37  ;;  %v1198_v22 = vand.u32 4294901760, %v1197_v33  ;;  %v1221_v34 = vsub.f32 %v3983_v20, %v4890_v4  ;;  %v1204_v3 = vand.u32 4294901760, %v1203_v8  ;;  %v4892_v33 = vand.u32 4294901760, %v4001_v24 }
  0x8b   :  { %1175 = vmatpush1.msra.mxu1 %v1174_v6  ;;  %1007 = vmatpush1.msra.mxu0 %v3968_v15  ;;  %v1227_v61 = vsub.f32 %v3997_v23, %v4891_v41  ;;  %v1210_v6 = vand.u32 4294901760, %v1209_v48  ;;  %v1216_v4 = vand.u32 4294901760, %v1215_v40 }
  0x8c   :  { %1181 = vmatprep.subr.mxu1 %v1180_v59  ;;  %1009 = vmatprep.subr.mxu0 %v3975_v58  ;;  %v1233_v7 = vsub.f32 %v4001_v24, %v4892_v33  ;;  %v4893_v59 = vand.u32 4294901760, %v4013_v9  ;;  %v1222_v41 = vand.u32 4294901760, %v1221_v34  ;;  %v4896_v34 = vld [vmem:[#allocation7_spill] sm:$0xff] }
  0x8d   :  { %1187 = vmatpush1.msra.mxu1 %v1186_v49  ;;  %1011 = vmatpush1.msra.mxu0 %v3988_v38  ;;  %v1245_v49 = vsub.f32 %v4017_v50, %v4755_v32  ;;  %v1228_v48 = vand.u32 4294901760, %v1227_v61  ;;  %v4898_v61 = vld [vmem:[#allocation6_spill] sm:$0xff]  ;;  %v4909_v32 = vld [vmem:[#allocation19_spill] sm:$0xff] }
  0x8e   :  { %1193 = vmatprep.subr.mxu1 %v1192_v14  ;;  %v1239_v8 = vsub.f32 %v4013_v9, %v4893_v59  ;;  %1290 = vmatprep.subr.mxu0 %v3594_v53  ;;  %v4894_v14 = vld [vmem:[#allocation27_spill] sm:$0xff]  ;;  %v1234_v40 = vand.u32 4294901760, %v1233_v7  ;;  %v4901_v59 = vld [vmem:[#allocation9_spill] sm:$0xff] }
  0x8f   :  { %1199 = vmatpush1.msra.mxu1 %v1198_v22  ;;  %1050 = vmatmul.mubr.f32.vlgmr.msra.gmra.mxu0 %v4894_v14  ;;  %v1246_v22 = vand.u32 4294901760, %v1245_v49  ;;  %v4895_v7 = vld [vmem:[#allocation15_spill] sm:$0xff]  ;;  %v4904_v49 = vld [vmem:[#allocation12_spill] sm:$0xff]  ;;  %v4910_v14 = vld [vmem:[#allocation25_spill] sm:$0xff] }
  0x90   :  { %1205 = vmatprep.subr.mxu1 %v1204_v3  ;;  %1293 = vmatpush1.msra.mxu0 %v3578_v62  ;;  %v1240_v33 = vand.u32 4294901760, %v1239_v8  ;;  %v4897_v3 = vld [vmem:[#allocation20_spill] sm:$0xff]  ;;  %v4902_v8 = vld [vmem:[#allocation11_spill] sm:$0xff] }
  0x91   :  { %1211 = vmatpush1.msra.mxu1 %v1210_v6  ;;  %1296 = vmatprep.subr.mxu0 %v3611_v55  ;;  %v4899_v6 = vld [vmem:[#allocation17_spill] sm:$0xff] }
  0x92   :  { %1217 = vmatprep.subr.mxu1 %v1216_v4  ;;  %1299 = vmatpush1.msra.mxu0 %v3600_v44  ;;  %v4900_v4 = vld [vmem:[#allocation8_spill] sm:$0xff] }
  0x93   :  { %1223 = vmatpush1.msra.mxu1 %v1222_v41  ;;  %1302 = vmatprep.subr.mxu0 %v3633_v29  ;;  %v4903_v41 = vld [vmem:[#allocation10_spill] sm:$0xff] }
  0x94   :  { %1229 = vmatprep.subr.mxu1 %v1228_v48  ;;  %1305 = vmatpush1.msra.mxu0 %v3617_v12  ;;  %v4905_v48 = vld [vmem:[#allocation13_spill] sm:$0xff] }
  0x95   :  { %1235 = vmatpush1.msra.mxu1 %v1234_v40  ;;  %1308 = vmatprep.subr.mxu0 %v3671_v39  ;;  %v4906_v40 = vld [vmem:[#allocation5_spill] sm:$0xff] }
  0x96   :  { %1241 = vmatprep.subr.mxu1 %v1240_v33  ;;  %1280 = vmatprep.mubr.f32.mxu1 %v4792_v54  ;;  %v4907_v33 = vld [vmem:[#allocation18_spill] sm:$0xff] }
  0x97   :  { %1247 = vmatpush1.msra.mxu1 %v1246_v22  ;;  %1311 = vmatpush1.msra.mxu0 %v3648_v0  ;;  %v4908_v22 = vld [vmem:[#allocation21_spill] sm:$0xff] }
  0x98   :  { %1282 = vmatmul.mubr.f32.vlgmr.msra.gmra.mxu1 %v4856_v56  ;;  %1314 = vmatprep.subr.mxu0 %v3702_v63  ;;  %v4911_v56 = vld [vmem:[#allocation14_spill] sm:$0xff] }
  0x99   :  { %1426 = vmatprep.subr.mxu1 %v3556_v28  ;;  %1317 = vmatpush1.msra.mxu0 %v3707_v51 }
  0x9a   :  { %1428 = vmatpush1.msra.mxu1 %v3548_v11  ;;  %1320 = vmatprep.subr.mxu0 %v3743_v10 }
  0x9b   :  { %1430 = vmatprep.subr.mxu1 %v3572_v57  ;;  %1323 = vmatpush1.msra.mxu0 %v3715_v31 }
  0x9c   :  { %1432 = vmatpush1.msra.mxu1 %v3564_v47  ;;  %1326 = vmatprep.subr.mxu0 %v3759_v19 }
  0x9d   :  { %1434 = vmatprep.subr.mxu1 %v3588_v60  ;;  %1329 = vmatpush1.msra.mxu0 %v3749_v1 }
  0x9e   :  { %1436 = vmatpush1.msra.mxu1 %v3580_v27  ;;  %1332 = vmatprep.subr.mxu0 %v4895_v7 }
  0x9f   :  { %1438 = vmatprep.subr.mxu1 %v4896_v34  ;;  %1335 = vmatpush1.msra.mxu0 %v4897_v3 }
  0xa0   :  { %1440 = vmatpush1.msra.mxu1 %v4898_v61  ;;  %1338 = vmatprep.subr.mxu0 %v4899_v6 }
  0xa1   :  { %1442 = vmatprep.subr.mxu1 %v4900_v4  ;;  %1341 = vmatpush1.msra.mxu0 %v3818_v21 }
  0xa2   :  { %1444 = vmatpush1.msra.mxu1 %v4901_v59  ;;  %1344 = vmatprep.subr.mxu0 %v3885_v35 }
  0xa3   :  { %1446 = vmatprep.subr.mxu1 %v4902_v8  ;;  %1347 = vmatpush1.msra.mxu0 %v3850_v43 }
  0xa4   :  { %1448 = vmatpush1.msra.mxu1 %v4903_v41  ;;  %1350 = vmatprep.subr.mxu0 %v3913_v16 }
  0xa5   :  { %1450 = vmatprep.subr.mxu1 %v4904_v49  ;;  %1353 = vmatpush1.msra.mxu0 %v3892_v2 }
  0xa6   :  { %1452 = vmatpush1.msra.mxu1 %v4905_v48  ;;  %1356 = vmatprep.subr.mxu0 %v3938_v36 }
  0xa7   :  { %1454 = vmatprep.subr.mxu1 %v4906_v40  ;;  %1359 = vmatpush1.msra.mxu0 %v3923_v52  ;;  %v4912_v52 = vld [vmem:[#allocation26_spill] sm:$0xff] }
  0xa8   :  { %1456 = vmatpush1.msra.mxu1 %v4907_v33  ;;  %1362 = vmatprep.subr.mxu0 %v3962_v45 }
  0xa9   :  { %1458 = vmatprep.subr.mxu1 %v4908_v22  ;;  %1365 = vmatpush1.msra.mxu0 %v3943_v5 }
  0xaa   :  { %1460 = vmatpush1.msra.mxu1 %v4909_v32  ;;  %1368 = vmatprep.subr.mxu0 %v3979_v13 }
  0xab   :  { %1462 = vmatprep.subr.mxu1 %v4910_v14  ;;  %1371 = vmatpush1.msra.mxu0 %v3983_v20  ;;  %v4913_v20 = vld [vmem:[#allocation23_spill] sm:$0xff] }
  0xac   :  { %1464 = vmatpush1.msra.mxu1 %v4911_v56  ;;  %1374 = vmatprep.subr.mxu0 %v3997_v23 }
  0xad   :  { %1466 = vmatprep.subr.mxu1 %v4912_v52  ;;  %1377 = vmatpush1.msra.mxu0 %v4001_v24  ;;  %v4914_v52 = vand.u32 4294901760, %v3594_v53  ;;  %v4918_v53 = vand.u32 4294901760, %v3633_v29  ;;  %v4923_v29 = vand.u32 4294901760, %v3702_v63  ;;  %v4927_v63 = vand.u32 4294901760, %v3759_v19  ;;  %v87_v19 = vld [vmem:[%s4636_s1 + $0x250] sm:$0xff] }
  0xae   :  { %1468 = vmatpush1.msra.mxu1 %v3837_v25  ;;  %1380 = vmatprep.subr.mxu0 %v4013_v9  ;;  %v4915_v25 = vand.u32 4294901760, %v3578_v62  ;;  %v4919_v62 = vand.u32 4294901760, %v3617_v12  ;;  %v4924_v12 = vand.u32 4294901760, %v3707_v51  ;;  %v4934_v51 = vand.u32 4294901760, %v3850_v43  ;;  %v4938_v43 = vld [vmem:[#allocation29_spill] sm:$0xff] }
  0xaf   :  { %1470 = vmatprep.subr.mxu1 %v3882_v26  ;;  %1383 = vmatpush1.msra.mxu0 %v4017_v50  ;;  %v4916_v50 = vand.u32 4294901760, %v3611_v55  ;;  %v4920_v55 = vand.u32 4294901760, %v3671_v39  ;;  %v4925_v39 = vand.u32 4294901760, %v3743_v10  ;;  %v4936_v10 = vand.u32 4294901760, %v3892_v2 }
  0xb0   :  { %1416 = vmatprep.mubr.f32.mxu0 %v4792_v54  ;;  %1472 = vmatpush1.msra.mxu1 %v3870_v42  ;;  %v4917_v42 = vand.u32 4294901760, %v3600_v44  ;;  %v4921_v44 = vand.u32 4294901760, %v3648_v0  ;;  %v4926_v0 = vand.u32 4294901760, %v3715_v31  ;;  %v4935_v31 = vand.u32 4294901760, %v3913_v16  ;;  %v82_v16 = vld [vmem:[%s4636_s1 + $0x228] sm:$0xff] }
  0xb1   :  { %1419 = vmatmul.mubr.f32.vlgmr.msra.gmra.mxu0 %v4913_v20  ;;  %1474 = vmatprep.subr.mxu1 %v3906_v30  ;;  %v4940_v2 = vand.u32 4294901760, %v3962_v45  ;;  %v4943_v45 = vld [vmem:[#allocation30_spill] sm:$0xff] }
  0xb2   :  { %1534 = vmatprep.subr.mxu0 %v4914_v52  ;;  %1476 = vmatpush1.msra.mxu1 %v3899_v18  ;;  %v4941_v52 = vand.u32 4294901760, %v3943_v5  ;;  %v77_v5 = vld [vmem:[%s4636_s1 + $0x200] sm:$0xff] }
  0xb3   :  { %1538 = vmatpush1.msra.mxu0 %v4915_v25  ;;  %1478 = vmatprep.subr.mxu1 %v3931_v17  ;;  %v4922_v25 = vld [vmem:[#allocation24_spill] sm:$0xff] }
  0xb4   :  { %1542 = vmatprep.subr.mxu0 %v4916_v50  ;;  %1480 = vmatpush1.msra.mxu1 %v3945_v46  ;;  %v4213_v50 = vand.u32 4294901760, %v87_v19 }
  0xb5   :  { %1546 = vmatpush1.msra.mxu0 %v4917_v42  ;;  %1482 = vmatprep.subr.mxu1 %v3955_v37 }
  0xb6   :  { %1550 = vmatprep.subr.mxu0 %v4918_v53  ;;  %1484 = vmatpush1.msra.mxu1 %v3968_v15 }
  0xb7   :  { %1554 = vmatpush1.msra.mxu0 %v4919_v62  ;;  %1486 = vmatprep.subr.mxu1 %v3975_v58  ;;  %v57_v62 = vld [vmem:[%s4636_s1 + $0x160] sm:$0xff] }
  0xb8   :  { %1558 = vmatprep.subr.mxu0 %v4920_v55  ;;  %1488 = vmatpush1.msra.mxu1 %v3988_v38 }
  0xb9   :  { %1521 = vmatprep.mubr.f32.mxu1 %v4792_v54  ;;  %1562 = vmatpush1.msra.mxu0 %v4921_v44 }
  0xba   :  { %1525 = vmatmul.mubr.f32.vlgmr.msra.gmra.mxu1 %v4922_v25  ;;  %1566 = vmatprep.subr.mxu0 %v4923_v29  ;;  %v52_v29 = vld [vmem:[%s4636_s1 + $0x138] sm:$0xff] }
  0xbb   :  { %1700 = vmatprep.subr.mxu1 %v3556_v28  ;;  %1570 = vmatpush1.msra.mxu0 %v4924_v12  ;;  %v4928_v28 = vand.u32 4294901760, %v3749_v1  ;;  %v4937_v1 = vand.u32 4294901760, %v3938_v36  ;;  %v4942_v36 = vand.u32 4294901760, %v3979_v13  ;;  %v4227_v13 = vand.u32 4294901760, %v82_v16 }
  0xbc   :  { %1702 = vmatpush1.msra.mxu1 %v3548_v11  ;;  %1574 = vmatprep.subr.mxu0 %v4925_v39  ;;  %v4929_v11 = vand.u32 4294901760, %v4895_v7  ;;  %v4944_v7 = vand.u32 4294901760, %v4943_v45 }
  0xbd   :  { %1704 = vmatprep.subr.mxu1 %v3572_v57  ;;  %1578 = vmatpush1.msra.mxu0 %v4926_v0  ;;  %v4930_v57 = vand.u32 4294901760, %v4897_v3  ;;  %v4946_v3 = vld [vmem:[#allocation26_spill] sm:$0xff] }
  0xbe   :  { %1706 = vmatpush1.msra.mxu1 %v3564_v47  ;;  %1582 = vmatprep.subr.mxu0 %v4927_v63  ;;  %v4931_v47 = vand.u32 4294901760, %v4899_v6  ;;  %v4948_v6 = vld [vmem:[#allocation16_spill] sm:$0xff] }
  0xbf   :  { %1708 = vmatprep.subr.mxu1 %v3588_v60  ;;  %1586 = vmatpush1.msra.mxu0 %v4928_v28  ;;  %v4932_v60 = vand.u32 4294901760, %v3818_v21  ;;  %v4939_v21 = vand.u32 4294901760, %v4938_v43  ;;  %v4315_v28 = vand.u32 4294901760, %v52_v29 }
  0xc0   :  { %1710 = vmatpush1.msra.mxu1 %v3580_v27  ;;  %1590 = vmatprep.subr.mxu0 %v4929_v11  ;;  %v4933_v27 = vand.u32 4294901760, %v3885_v35  ;;  %v92_v35 = vld [vmem:[%s4636_s1 + $0x278] sm:$0xff] }
  0xc1   :  { %1712 = vmatprep.subr.mxu1 %v4896_v34  ;;  %1594 = vmatpush1.msra.mxu0 %v4930_v57  ;;  %v4202_v42 = vand.u32 4294901760, %v92_v35  ;;  %v4945_v34 = vand.u32 4294901760, %v3997_v23  ;;  %v4239_v23 = vsub.f32 %v87_v19, %v4213_v50  ;;  %v32_v19 = vld [vmem:[%s4636_s1 + $0x98] sm:$0xff] }
  0xc2   :  { %1714 = vmatpush1.msra.mxu1 %v4898_v61  ;;  %1598 = vmatprep.subr.mxu0 %v4931_v47  ;;  %v72_v61 = vld [vmem:[%s4636_s1 + $0x1d8] sm:$0xff] }
  0xc3   :  { %1716 = vmatprep.subr.mxu1 %v4900_v4  ;;  %1602 = vmatpush1.msra.mxu0 %v4932_v60  ;;  %v4241_v4 = vand.u32 4294901760, %v77_v5  ;;  %v1904_v53 = vand.u32 4294901760, %v4239_v23 }
  0xc4   :  { %1718 = vmatpush1.msra.mxu1 %v4901_v59  ;;  %1606 = vmatprep.subr.mxu0 %v4933_v27  ;;  %v4950_v59 = vld [vmem:[#allocation31_spill] sm:$0xff] }
  0xc5   :  { %1720 = vmatprep.subr.mxu1 %v4902_v8  ;;  %1610 = vmatpush1.msra.mxu0 %v4934_v51  ;;  %v4951_v8 = vand.u32 4294901760, %v4950_v59  ;;  %v1905_v12 = vsub.f32 %v4239_v23, %v1904_v53 }
  0xc6   :  { %1722 = vmatpush1.msra.mxu1 %v4903_v41  ;;  %1614 = vmatprep.subr.mxu0 %v4935_v31  ;;  %v4952_v41 = vld [vmem:[#allocation28_spill] sm:$0xff] }
  0xc7   :  { %1724 = vmatprep.subr.mxu1 %v4904_v49  ;;  %1618 = vmatpush1.msra.mxu0 %v4936_v10  ;;  %v4254_v49 = vand.u32 4294901760, %v72_v61  ;;  %v1906_v57 = vand.u32 4294901760, %v1905_v12  ;;  %v37_v31 = vld [vmem:[%s4636_s1 + $0xc0] sm:$0xff] }
  0xc8   :  { %1726 = vmatpush1.msra.mxu1 %v4905_v48  ;;  %1622 = vmatprep.subr.mxu0 %v4937_v1 }
  0xc9   :  { %1728 = vmatprep.subr.mxu1 %v4906_v40  ;;  %1626 = vmatpush1.msra.mxu0 %v4939_v21  ;;  %v4953_v40 = vld [vmem:[#allocation22_spill] sm:$0xff] }
  0xca   :  { %1730 = vmatpush1.msra.mxu1 %v4907_v33  ;;  %1630 = vmatprep.subr.mxu0 %v4940_v2  ;;  %v4265_v33 = vsub.f32 %v77_v5, %v4241_v4 }
  0xcb   :  { %1732 = vmatprep.subr.mxu1 %v4908_v22  ;;  %1634 = vmatpush1.msra.mxu0 %v4941_v52 }
  0xcc   :  { %1734 = vmatpush1.msra.mxu1 %v4909_v32  ;;  %1638 = vmatprep.subr.mxu0 %v4942_v36  ;;  %v4225_v32 = vsub.f32 %v92_v35, %v4202_v42  ;;  %v1918_v39 = vand.u32 4294901760, %v4265_v33  ;;  %v4342_v35 = vsub.f32 %v52_v29, %v4315_v28  ;;  %v4362_v36 = vand.u32 4294901760, %v37_v31 }
  0xcd   :  { %1736 = vmatprep.subr.mxu1 %v4910_v14  ;;  %1642 = vmatpush1.msra.mxu0 %v4944_v7  ;;  %v4947_v14 = vand.u32 4294901760, %v4001_v24  ;;  %v67_v24 = vld [vmem:[%s4636_s1 + $0x1b0] sm:$0xff] }
  0xce   :  { %1738 = vmatpush1.msra.mxu1 %v4911_v56  ;;  %1646 = vmatprep.subr.mxu0 %v4945_v34  ;;  %v4949_v56 = vand.u32 4294901760, %v4013_v9  ;;  %v4252_v9 = vsub.f32 %v82_v16, %v4227_v13  ;;  %v1897_v48 = vand.u32 4294901760, %v4225_v32  ;;  %v4267_v22 = vand.u32 4294901760, %v67_v24  ;;  %v27_v7 = vld [vmem:[%s4636_s1 + $0x70] sm:$0xff] }
  0xcf   :  { %1740 = vmatprep.subr.mxu1 %v4946_v3  ;;  %1650 = vmatpush1.msra.mxu0 %v4947_v14  ;;  %v1919_v47 = vsub.f32 %v4265_v33, %v1918_v39  ;;  %v4376_v3 = vand.u32 4294901760, %v32_v19  ;;  %v1953_v14 = vand.u32 4294901760, %v4342_v35  ;;  %v4389_v59 = vsub.f32 %v37_v31, %v4362_v36 }
  0xd0   :  { %1742 = vmatpush1.msra.mxu1 %v4948_v6  ;;  %1654 = vmatprep.subr.mxu0 %v4949_v56  ;;  %v1898_v55 = vsub.f32 %v4225_v32, %v1897_v48  ;;  %v1911_v44 = vand.u32 4294901760, %v4252_v9  ;;  %v22_v6 = vld [vmem:[%s4636_s1 + $0x48] sm:$0xff] }
  0xd1   :  { %1744 = vmatprep.subr.mxu1 %v3882_v26  ;;  %1658 = vmatpush1.msra.mxu0 %v4951_v8  ;;  %v62_v26 = vld [vmem:[%s4636_s1 + $0x188] sm:$0xff]  ;;  %v1920_v2 = vand.u32 4294901760, %v1919_v47  ;;  %v4391_v8 = vand.u32 4294901760, %v27_v7  ;;  %v4406_v29 = vand.u32 4294901760, %v22_v6 }
  0xd2   :  { %1691 = vmatprep.mubr.f32.mxu0 %v4792_v54  ;;  %1746 = vmatpush1.msra.mxu1 %v4952_v41  ;;  %v1899_v0 = vand.u32 4294901760, %v1898_v55  ;;  %v1912_v63 = vsub.f32 %v4252_v9, %v1911_v44  ;;  %v1954_v55 = vsub.f32 %v4342_v35, %v1953_v14 }
  0xd3   :  { %1693 = vmatmul.mubr.f32.vlgmr.msra.gmra.mxu0 %v4953_v40  ;;  %1748 = vmatprep.subr.mxu1 %v3906_v30  ;;  %v4275_v30 = vand.u32 4294901760, %v62_v26  ;;  %v4425_v31 = vsub.f32 %v22_v6, %v4406_v29 }
  0xd4   :  { %2637 = vmatprep.subr.mxu0 %v4792_v54  ;;  %1750 = vmatpush1.msra.mxu1 %v3899_v18  ;;  %v4280_v18 = vsub.f32 %v72_v61, %v4254_v49  ;;  %v1913_v10 = vand.u32 4294901760, %v1912_v63  ;;  %v1955_v47 = vand.u32 4294901760, %v1954_v55 }
  0xd5   :  { %2638 = vmatpush3.msra.mxu0 %v4202_v42  ;;  %1752 = vmatprep.subr.mxu1 %v3931_v17  ;;  %v4288_v17 = vand.u32 4294901760, %v57_v62 }
  0xd6   :  { %2639 = vmatprep.subr.mxu0 %v4792_v54  ;;  %1754 = vmatpush1.msra.mxu1 %v3945_v46  ;;  %v4296_v46 = vsub.f32 %v67_v24, %v4267_v22 }
  0xd7   :  { %2640 = vmatpush3.msra.mxu0 %v4213_v50  ;;  %1756 = vmatprep.subr.mxu1 %v3955_v37  ;;  %v4305_v37 = vsub.f32 %v62_v26, %v4275_v30  ;;  %v4321_v11 = vsub.f32 %v57_v62, %v4288_v17  ;;  %v17_v26 = vld [vmem:[%s4636_s1 + $0x20] sm:$0xff]  ;;  %v4401_v62 = vsub.f32 %v32_v19, %v4376_v3 }
  0xd8   :  { %2641 = vmatprep.subr.mxu0 %v4792_v54  ;;  %1758 = vmatpush1.msra.mxu1 %v3968_v15  ;;  %v47_v15 = vld [vmem:[%s4636_s1 + $0x110] sm:$0xff]  ;;  %v1932_v27 = vand.u32 4294901760, %v4296_v46 }
  0xd9   :  { %2642 = vmatpush3.msra.mxu0 %v4227_v13  ;;  %1760 = vmatprep.subr.mxu1 %v3975_v58  ;;  %v1925_v58 = vand.u32 4294901760, %v4280_v18  ;;  %v4331_v60 = vand.u32 4294901760, %v47_v15  ;;  %v1939_v51 = vand.u32 4294901760, %v4305_v37  ;;  %v1946_v21 = vand.u32 4294901760, %v4321_v11 }
  0xda   :  { %2643 = vmatprep.subr.mxu0 %v4792_v54  ;;  %1762 = vmatpush1.msra.mxu1 %v3988_v38  ;;  %v42_v38 = vld [vmem:[%s4636_s1 + $0xe8] sm:$0xff]  ;;  %v1933_v16 = vsub.f32 %v4296_v46, %v1932_v27 }
  0xdb   :  { %1795 = vmatprep.mubr.f32.mxu1 %v4792_v54  ;;  %2644 = vmatpush3.msra.mxu0 %v4241_v4  ;;  %v1926_v1 = vsub.f32 %v4280_v18, %v1925_v58  ;;  %v4347_v43 = vand.u32 4294901760, %v42_v38  ;;  %v4357_v52 = vsub.f32 %v47_v15, %v4331_v60  ;;  %v1940_v45 = vsub.f32 %v4305_v37, %v1939_v51 }
  0xdc   :  { %1797 = vmatmul.mubr.f32.vlgmr.msra.gmra.mxu1 %v4953_v40  ;;  %2645 = vmatprep.subr.mxu0 %v4792_v54  ;;  %v1947_v61 = vsub.f32 %v4321_v11, %v1946_v21  ;;  %v1934_v56 = vand.u32 4294901760, %v1933_v16 }
  0xdd   :  { %2672 = vmatprep.subr.mxu1 %v4792_v54  ;;  %2646 = vmatpush3.msra.mxu0 %v4254_v49  ;;  %v1927_v5 = vand.u32 4294901760, %v1926_v1  ;;  %v4374_v34 = vsub.f32 %v42_v38, %v4347_v43  ;;  %v1960_v24 = vand.u32 4294901760, %v4357_v52  ;;  %v1941_v41 = vand.u32 4294901760, %v1940_v45 }
  0xde   :  { %2673 = vmatpush3.msra.mxu1 %v1899_v0  ;;  %2647 = vmatprep.subr.mxu0 %v4792_v54  ;;  %v1948_v15 = vand.u32 4294901760, %v1947_v61  ;;  %v4413_v0 = vsub.f32 %v27_v7, %v4391_v8  ;;  %v4418_v38 = vand.u32 4294901760, %v17_v26  ;;  %v1981_v1 = vand.u32 4294901760, %v4401_v62 }
  0xdf   :  { %2674 = vmatprep.subr.mxu1 %v4792_v54  ;;  %2648 = vmatpush3.msra.mxu0 %v4267_v22  ;;  %v1967_v12 = vand.u32 4294901760, %v4374_v34  ;;  %v1961_v63 = vsub.f32 %v4357_v52, %v1960_v24  ;;  %v1995_v61 = vand.u32 4294901760, %v4425_v31 }
  0xe0   :  { %2675 = vmatpush3.msra.mxu1 %v1906_v57  ;;  %2649 = vmatprep.subr.mxu0 %v4792_v54  ;;  %v1974_v57 = vand.u32 4294901760, %v4389_v59  ;;  %v1988_v45 = vand.u32 4294901760, %v4413_v0 }
  0xe1   :  { %2676 = vmatprep.subr.mxu1 %v4792_v54  ;;  %2650 = vmatpush3.msra.mxu0 %v4275_v30  ;;  %v1962_v19 = vand.u32 4294901760, %v1961_v63  ;;  %v1996_v55 = vsub.f32 %v4425_v31, %v1995_v61 }
  0xe2   :  { %2677 = vmatpush3.msra.mxu1 %v1913_v10  ;;  %2651 = vmatprep.subr.mxu0 %v4792_v54  ;;  %v1968_v10 = vsub.f32 %v4374_v34, %v1967_v12  ;;  %v1975_v16 = vsub.f32 %v4389_v59, %v1974_v57 }
  0xe3   :  { %2678 = vmatprep.subr.mxu1 %v4792_v54  ;;  %2652 = vmatpush3.msra.mxu0 %v4288_v17 }
  0xe4   :  { %2679 = vmatpush3.msra.mxu1 %v1920_v2  ;;  %2653 = vmatprep.subr.mxu0 %v4792_v54  ;;  %v4435_v2 = vsub.f32 %v17_v26, %v4418_v38  ;;  %v1969_v7 = vand.u32 4294901760, %v1968_v10  ;;  %v1976_v6 = vand.u32 4294901760, %v1975_v16  ;;  %v1997_v10 = vand.u32 4294901760, %v1996_v55 }
  0xe5   :  { %2680 = vmatprep.subr.mxu1 %v4792_v54  ;;  %2654 = vmatpush3.msra.mxu0 %v4315_v28 }
  0xe6   :  { %2681 = vmatpush3.msra.mxu1 %v1927_v5  ;;  %2655 = vmatprep.subr.mxu0 %v4792_v54  ;;  %v1982_v5 = vsub.f32 %v4401_v62, %v1981_v1 }
  0xe7   :  { %2682 = vmatprep.subr.mxu1 %v4792_v54  ;;  %2656 = vmatpush3.msra.mxu0 %v4331_v60 }
  0xe8   :  { %2683 = vmatpush3.msra.mxu1 %v1934_v56  ;;  %2657 = vmatprep.subr.mxu0 %v4792_v54  ;;  %v1989_v56 = vsub.f32 %v4413_v0, %v1988_v45  ;;  %v1983_v26 = vand.u32 4294901760, %v1982_v5 }
  0xe9   :  { %2684 = vmatprep.subr.mxu1 %v4792_v54  ;;  %2658 = vmatpush3.msra.mxu0 %v4347_v43 }
  0xea   :  { %2685 = vmatpush3.msra.mxu1 %v1941_v41  ;;  %2659 = vmatprep.subr.mxu0 %v4792_v54  ;;  %v2002_v41 = vand.u32 4294901760, %v4435_v2 }
  0xeb   :  { %2686 = vmatprep.subr.mxu1 %v4792_v54  ;;  %2660 = vmatpush3.msra.mxu0 %v4362_v36 }
  0xec   :  { %2687 = vmatpush3.msra.mxu1 %v1948_v15  ;;  %2661 = vmatprep.subr.mxu0 %v4792_v54  ;;  %v1990_v15 = vand.u32 4294901760, %v1989_v56  ;;  %v2003_v63 = vsub.f32 %v4435_v2, %v2002_v41 }
  0xed   :  { %2688 = vmatprep.subr.mxu1 %v4792_v54  ;;  %2662 = vmatpush3.msra.mxu0 %v4376_v3 }
  0xee   :  { %2689 = vmatpush3.msra.mxu1 %v1955_v47  ;;  %2663 = vmatprep.subr.mxu0 %v4792_v54  ;;  %v4954_v47 = vld [vmem:[#allocation27_spill] sm:$0xff] }
  0xef   :  { %2690 = vmatprep.subr.mxu1 %v4792_v54  ;;  %2664 = vmatpush3.msra.mxu0 %v4391_v8 }
  0xf0   :  { %2691 = vmatpush3.msra.mxu1 %v1962_v19  ;;  %2665 = vmatprep.subr.mxu0 %v4792_v54  ;;  %v2004_v19 = vand.u32 4294901760, %v2003_v63 }
  0xf1   :  { %2692 = vmatprep.subr.mxu1 %v4792_v54  ;;  %2666 = vmatpush3.msra.mxu0 %v4406_v29 }
  0xf2   :  { %2693 = vmatpush3.msra.mxu1 %v1969_v7  ;;  %2667 = vmatprep.subr.mxu0 %v4792_v54 }
  0xf3   :  { %2694 = vmatprep.subr.mxu1 %v4792_v54  ;;  %2668 = vmatpush3.msra.mxu0 %v4418_v38 }
  0xf4   :  { %2695 = vmatpush3.msra.mxu1 %v1976_v6  ;;  %2669 = vmatprep.mubr.msk.f32.mxu0 %vm2876_vm0, %v4792_v54 }
  0xf5   :  { %2696 = vmatprep.subr.mxu1 %v4792_v54  ;;  %2707 = vmatprep.subr.mxu0 %v4792_v54 }
  0xf6   :  { %2670 = vmatmul.mubr.f32.vlgmr.msra.gmra.mxu0 %v4954_v47  ;;  %2697 = vmatpush3.msra.mxu1 %v1983_v26 }
  0xf7   :  { %2708 = vmatpush3.msra.mxu0 %v4225_v32  ;;  %2698 = vmatprep.subr.mxu1 %v4792_v54 }
  0xf8   :  { %2709 = vmatprep.subr.mxu0 %v4792_v54  ;;  %2699 = vmatpush3.msra.mxu1 %v1990_v15 }
  0xf9   :  { %2710 = vmatpush3.msra.mxu0 %v4239_v23  ;;  %2700 = vmatprep.subr.mxu1 %v4792_v54 }
  0xfa   :  { %2711 = vmatprep.subr.mxu0 %v4792_v54  ;;  %2701 = vmatpush3.msra.mxu1 %v1997_v10 }
  0xfb   :  { %2712 = vmatpush3.msra.mxu0 %v4252_v9  ;;  %2702 = vmatprep.subr.mxu1 %v4792_v54 }
  0xfc   :  { %2713 = vmatprep.subr.mxu0 %v4792_v54  ;;  %2703 = vmatpush3.msra.mxu1 %v2004_v19 }
  0xfd   :  { %2704 = vmatprep.mubr.msk.f32.mxu1 %vm2876_vm0, %v4792_v54  ;;  %2714 = vmatpush3.msra.mxu0 %v4265_v33 }
  0xfe   :  { %2705 = vmatmul.mubr.f32.vlgmr.msra.gmra.mxu1 %v4953_v40  ;;  %2715 = vmatprep.subr.mxu0 %v4792_v54 }
  0xff   :  { %2742 = vmatprep.subr.mxu1 %v4792_v54  ;;  %2716 = vmatpush3.msra.mxu0 %v4280_v18 }
 0x100   :  { %2743 = vmatpush3.msra.mxu1 %v4202_v42  ;;  %2717 = vmatprep.subr.mxu0 %v4792_v54 }
 0x101   :  { %2744 = vmatprep.subr.mxu1 %v4792_v54  ;;  %2718 = vmatpush3.msra.mxu0 %v4296_v46 }
 0x102   :  { %2745 = vmatpush3.msra.mxu1 %v4213_v50  ;;  %2719 = vmatprep.subr.mxu0 %v4792_v54 }
 0x103   :  { %2746 = vmatprep.subr.mxu1 %v4792_v54  ;;  %2720 = vmatpush3.msra.mxu0 %v4305_v37  ;;  %v2877_v37 = vmov 1983009808  }
 0x104   :  { %2747 = vmatpush3.msra.mxu1 %v4227_v13  ;;  %2721 = vmatprep.subr.mxu0 %v4792_v54 }
 0x105   :  { %2748 = vmatprep.subr.mxu1 %v4792_v54  ;;  %2722 = vmatpush3.msra.mxu0 %v4321_v11 }
 0x106   :  { %2749 = vmatpush3.msra.mxu1 %v4241_v4  ;;  %2723 = vmatprep.subr.mxu0 %v4792_v54 }
 0x107   :  { %2750 = vmatprep.subr.mxu1 %v4792_v54  ;;  %2724 = vmatpush3.msra.mxu0 %v4342_v35 }
 0x108   :  { %2751 = vmatpush3.msra.mxu1 %v4254_v49  ;;  %2725 = vmatprep.subr.mxu0 %v4792_v54 }
 0x109   :  { %2752 = vmatprep.subr.mxu1 %v4792_v54  ;;  %2726 = vmatpush3.msra.mxu0 %v4357_v52 }
 0x10a   :  { %2753 = vmatpush3.msra.mxu1 %v4267_v22  ;;  %2727 = vmatprep.subr.mxu0 %v4792_v54 }
 0x10b   :  { %2754 = vmatprep.subr.mxu1 %v4792_v54  ;;  %2728 = vmatpush3.msra.mxu0 %v4374_v34 }
 0x10c   :  { %2755 = vmatpush3.msra.mxu1 %v4275_v30  ;;  %2729 = vmatprep.subr.mxu0 %v4792_v54 }
 0x10d   :  { %2756 = vmatprep.subr.mxu1 %v4792_v54  ;;  %2730 = vmatpush3.msra.mxu0 %v4389_v59 }
 0x10e   :  { %2757 = vmatpush3.msra.mxu1 %v4288_v17  ;;  %2731 = vmatprep.subr.mxu0 %v4792_v54 }
 0x10f   :  { %2758 = vmatprep.subr.mxu1 %v4792_v54  ;;  %2732 = vmatpush3.msra.mxu0 %v4401_v62 }
 0x110   :  { %2759 = vmatpush3.msra.mxu1 %v4315_v28  ;;  %2733 = vmatprep.subr.mxu0 %v4792_v54 }
 0x111   :  { %2760 = vmatprep.subr.mxu1 %v4792_v54  ;;  %2734 = vmatpush3.msra.mxu0 %v4413_v0 }
 0x112   :  { %2761 = vmatpush3.msra.mxu1 %v4331_v60  ;;  %2735 = vmatprep.subr.mxu0 %v4792_v54 }
 0x113   :  { %2762 = vmatprep.subr.mxu1 %v4792_v54  ;;  %2736 = vmatpush3.msra.mxu0 %v4425_v31 }
 0x114   :  { %2763 = vmatpush3.msra.mxu1 %v4347_v43  ;;  %2737 = vmatprep.subr.mxu0 %v4792_v54 }
 0x115   :  { %2764 = vmatprep.subr.mxu1 %v4792_v54  ;;  %2738 = vmatpush3.msra.mxu0 %v4435_v2 }
 0x116   :  { %2739 = vmatprep.mubr.msk.f32.mxu0 %vm2876_vm0, %v4792_v54  ;;  %2765 = vmatpush3.msra.mxu1 %v4362_v36 }
 0x117   :  { %2740 = vmatmul.mubr.f32.vlgmr.msra.gmra.mxu0 %v4913_v20  ;;  %2766 = vmatprep.subr.mxu1 %v4792_v54  ;;  %v196_v20 = vpop.f32.mrf.mxu0 }
 0x118   :  { %2777 = vmatprep.subr.mxu0 %v4792_v54  ;;  %2767 = vmatpush3.msra.mxu1 %v4376_v3 }
 0x119   :  { %2778 = vmatpush3.msra.mxu0 %v1897_v48  ;;  %2768 = vmatprep.subr.mxu1 %v4792_v54 }
 0x11a   :  { %2779 = vmatprep.subr.mxu0 %v4792_v54  ;;  %2769 = vmatpush3.msra.mxu1 %v4391_v8 }
 0x11b   :  { %2780 = vmatpush3.msra.mxu0 %v1904_v53  ;;  %2770 = vmatprep.subr.mxu1 %v4792_v54 }
 0x11c   :  { %2781 = vmatprep.subr.mxu0 %v4792_v54  ;;  %2771 = vmatpush3.msra.mxu1 %v4406_v29 }
 0x11d   :  { %2782 = vmatpush3.msra.mxu0 %v1911_v44  ;;  %2772 = vmatprep.subr.mxu1 %v4792_v54 }
 0x11e   :  { %2783 = vmatprep.subr.mxu0 %v4792_v54  ;;  %2773 = vmatpush3.msra.mxu1 %v4418_v38 }
 0x11f   :  { %2774 = vmatprep.mubr.msk.f32.mxu1 %vm2876_vm0, %v4792_v54  ;;  %2784 = vmatpush3.msra.mxu0 %v1918_v39 }
 0x120   :  { %2775 = vmatmul.mubr.f32.vlgmr.msra.gmra.mxu1 %v4922_v25  ;;  %2785 = vmatprep.subr.mxu0 %v4792_v54  ;;  %v198_v25 = vpop.f32.mrf.mxu0 }
 0x121   :  { %2812 = vmatprep.subr.mxu1 %v4792_v54  ;;  %2786 = vmatpush3.msra.mxu0 %v1925_v58  ;;  %v2456_v58 = vlaneseq }
 0x122   :  { %2813 = vmatpush3.msra.mxu1 %v4202_v42  ;;  %2787 = vmatprep.subr.mxu0 %v4792_v54  ;;  %v428_v42 = vpop.f32.mrf.mxu1 }
 0x123   :  { %2814 = vmatprep.subr.mxu1 %v4792_v54  ;;  %2788 = vmatpush3.msra.mxu0 %v1932_v27  ;;  %v429_v46 = vadd.f32 %v428_v42, %v196_v20 }
 0x124   :  { %2815 = vmatpush3.msra.mxu1 %v4213_v50  ;;  %2789 = vmatprep.subr.mxu0 %v4792_v54  ;;  %v565_v50 = vpop.f32.mrf.mxu0  ;;  %v430_v32 = vpop.f32.mrf.mxu1 }
 0x125   :  { %2816 = vmatprep.subr.mxu1 %v4792_v54  ;;  %2790 = vmatpush3.msra.mxu0 %v1939_v51  ;;  %v431_v44 = vadd.f32 %v430_v32, %v198_v25 }
 0x126   :  { %2817 = vmatpush3.msra.mxu1 %v4227_v13  ;;  %2791 = vmatprep.subr.mxu0 %v4792_v54  ;;  %v567_v13 = vpop.f32.mrf.mxu0  ;;  %v671_v23 = vpop.f32.mrf.mxu1 }
 0x127   :  { %2818 = vmatprep.subr.mxu1 %v4792_v54  ;;  %2792 = vmatpush3.msra.mxu0 %v1946_v21  ;;  %v568_v39 = vadd.f32 %v567_v13, %v431_v44 }
 0x128   :  { %2819 = vmatpush3.msra.mxu1 %v4241_v4  ;;  %2793 = vmatprep.subr.mxu0 %v4792_v54  ;;  %v673_v9 = vpop.f32.mrf.mxu1 }
 0x129   :  { %2820 = vmatprep.subr.mxu1 %v4792_v54  ;;  %2794 = vmatpush3.msra.mxu0 %v1953_v14  ;;  %v674_v27 = vadd.f32 %v673_v9, %v568_v39  ;;  %v2457_v14 = vshrl.u32 %v2456_v58, 7 }
 0x12a   :  { %2821 = vmatpush3.msra.mxu1 %v4254_v49  ;;  %2795 = vmatprep.subr.mxu0 %v4792_v54 }
 0x12b   :  { %2822 = vmatprep.subr.mxu1 %v4792_v54  ;;  %2796 = vmatpush3.msra.mxu0 %v1960_v24 }
 0x12c   :  { %2823 = vmatpush3.msra.mxu1 %v4267_v22  ;;  %2797 = vmatprep.subr.mxu0 %v4792_v54 }
 0x12d   :  { %2824 = vmatprep.subr.mxu1 %v4792_v54  ;;  %2798 = vmatpush3.msra.mxu0 %v1967_v12  ;;  %v839_v4 = vpop.f32.mrf.mxu0 }
 0x12e   :  { %2825 = vmatpush3.msra.mxu1 %v4275_v30  ;;  %2799 = vmatprep.subr.mxu0 %v4792_v54 }
 0x12f   :  { %2826 = vmatprep.subr.mxu1 %v4792_v54  ;;  %2800 = vmatpush3.msra.mxu0 %v1974_v57  ;;  %v841_v49 = vpop.f32.mrf.mxu0 }
 0x130   :  { %2827 = vmatpush3.msra.mxu1 %v4288_v17  ;;  %2801 = vmatprep.subr.mxu0 %v4792_v54  ;;  %v842_v52 = vadd.f32 %v841_v49, %v674_v27 }
 0x131   :  { %2828 = vmatprep.subr.mxu1 %v4792_v54  ;;  %2802 = vmatpush3.msra.mxu0 %v1981_v1 }
 0x132   :  { %2829 = vmatpush3.msra.mxu1 %v4315_v28  ;;  %2803 = vmatprep.subr.mxu0 %v4792_v54  ;;  %v2454_v28 = vunpack.c.l.s4 %v2877_v37 }
 0x133   :  { %2830 = vmatprep.subr.mxu1 %v4792_v54  ;;  %2804 = vmatpush3.msra.mxu0 %v1988_v45 }
 0x134   :  { %2831 = vmatpush3.msra.mxu1 %v4331_v60  ;;  %2805 = vmatprep.subr.mxu0 %v4792_v54  ;;  %v566_v60 = vadd.f32 %v565_v50, %v429_v46 }
 0x135   :  { %2832 = vmatprep.subr.mxu1 %v4792_v54  ;;  %2806 = vmatpush3.msra.mxu0 %v1995_v61 }
 0x136   :  { %2833 = vmatpush3.msra.mxu1 %v4347_v43  ;;  %2807 = vmatprep.subr.mxu0 %v4792_v54  ;;  %v943_v48 = vpop.f32.mrf.mxu1  ;;  %v672_v21 = vadd.f32 %v671_v23, %v566_v60 }
 0x137   :  { %2834 = vmatprep.subr.mxu1 %v4792_v54  ;;  %2808 = vmatpush3.msra.mxu0 %v2002_v41 }
 0x138   :  { %2809 = vmatprep.mubr.msk.f32.mxu0 %vm2876_vm0, %v4792_v54  ;;  %2835 = vmatpush3.msra.mxu1 %v4362_v36  ;;  %v945_v22 = vpop.f32.mrf.mxu1 }
 0x139   :  { %2810 = vmatmul.mubr.f32.vlgmr.msra.gmra.mxu0 %v4953_v40  ;;  %2836 = vmatprep.subr.mxu1 %v4792_v54  ;;  %v946_v24 = vadd.f32 %v945_v22, %v842_v52 }
 0x13a   :  { %2837 = vmatpush3.msra.mxu1 %v4376_v3  ;;  %2844 = vmatprep.mubr.msk.f32.mxu1 %vm2876_vm0, %v4792_v54  ;;  %v2455_v3 = vunpack.c.0.s8 %v2454_v28 }
 0x13b   :  { %2838 = vmatprep.subr.mxu1 %v4792_v54 }
 0x13c   :  { %2839 = vmatpush3.msra.mxu1 %v4391_v8  ;;  %v840_v8 = vadd.f32 %v839_v4, %v672_v21  ;;  %v2458_v31 = vsub.s32 %v2455_v3, %v2457_v14 }
 0x13d   :  { %2840 = vmatprep.subr.mxu1 %v4792_v54 }
 0x13e   :  { %2841 = vmatpush3.msra.mxu1 %v4406_v29  ;;  %v944_v0 = vadd.f32 %v943_v48, %v840_v8 }
 0x13f   :  { %2842 = vmatprep.subr.mxu1 %v4792_v54 }
 0x140   :  { %2843 = vmatpush3.msra.mxu1 %v4418_v38  ;;  %v2449_v2 = vcombine.low %v944_v0, %v946_v24  ;;  %v2450_v16 = vcombine.high %v944_v0, %v946_v24 }
 0x141   :  { %2845 = vmatmul.mubr.f32.vlgmr.msra.gmra.mxu1 %v4953_v40 }
 0x142   :  { %v2459_v6 = vrot.slane %v2449_v2, %v2458_v31  ;;  %v2466_v56 = vrot.slane %v2450_v16, %v2458_v31 }
 0x14f   :  { %v1051_v33 = vpop.f32.mrf.mxu0 }
 0x151   :  { %v1053_v53 = vpop.f32.mrf.mxu0 }
 0x158   :  { %v1283_v30 = vpop.f32.mrf.mxu1 }
 0x159   :  { %v1284_v51 = vadd.f32 %v1283_v30, %v1051_v33 }
 0x15a   :  { %v1285_v18 = vpop.f32.mrf.mxu1 }
 0x15b   :  { %v1286_v35 = vadd.f32 %v1285_v18, %v1053_v53 }
 0x171   :  { %v1420_v54 = vpop.f32.mrf.mxu0 }
 0x172   :  { %v1421_v36 = vadd.f32 %v1420_v54, %v1284_v51 }
 0x173   :  { %v1422_v17 = vpop.f32.mrf.mxu0 }
 0x174   :  { %v1423_v34 = vadd.f32 %v1422_v17, %v1286_v35 }
 0x17a   :  { %v1526_v40 = vpop.f32.mrf.mxu1 }
 0x17b   :  { %v1527_v62 = vadd.f32 %v1526_v40, %v1421_v36 }
 0x17c   :  { %v1528_v43 = vpop.f32.mrf.mxu1 }
 0x17d   :  { %v1529_v29 = vadd.f32 %v1528_v43, %v1423_v34 }
 0x193   :  { %v1694_v11 = vpop.f32.mrf.mxu0 }
 0x194   :  { %v1695_v38 = vadd.f32 %v1694_v11, %v1527_v62 }
 0x195   :  { %v1696_v59 = vpop.f32.mrf.mxu0 }
 0x196   :  { %v1697_v57 = vadd.f32 %v1696_v59, %v1529_v29 }
 0x19c   :  { %v1798_v12 = vpop.f32.mrf.mxu1 }
 0x19d   :  { %v1799_v45 = vadd.f32 %v1798_v12, %v1695_v38 }
 0x19e   :  { %v1800_v1 = vpop.f32.mrf.mxu1 }
 0x19f   :  { %v1801_v7 = vadd.f32 %v1800_v1, %v1697_v57 }
 0x1a1   :  { %v2451_v5 = vcombine.low %v1799_v45, %v1801_v7  ;;  %v2452_v61 = vcombine.high %v1799_v45, %v1801_v7 }
 0x1a3   :  { %v2473_v41 = vrot.slane %v2451_v5, %v2458_v31  ;;  %v2480_v26 = vrot.slane %v2452_v61, %v2458_v31 }
 0x1a5   :  { %v2481_v55 = vcombine.low %v2459_v6, %v2473_v41  ;;  %v2482_v15 = vcombine.high %v2459_v6, %v2473_v41  ;;  %v2483_v63 = vcombine.low %v2466_v56, %v2480_v26  ;;  %v2484_v47 = vcombine.high %v2466_v56, %v2480_v26 }
 0x1a7   :  { %2510 = vst [vmem:[#allocation2] sm:$0xff] %v2481_v55  ;;  %2513 = vst [vmem:[#allocation2 + $0xa] sm:$0xff] %v2482_v15 }
 0x1a8   :  { %2515 = vst [vmem:[#allocation2 + $0x14] sm:$0xff] %v2483_v63  ;;  %2517 = vst [vmem:[#allocation2 + $0x1e] sm:$0xff] %v2484_v47 }
 0x1b6   :  { %v1890_v10 = vpop.f32.mrf.mxu0 }
 0x1b8   :  { %v2671_v19 = vpop.f32.mrf.mxu0 }
 0x1be   :  { %v2041_v20 = vpop.f32.mrf.mxu1 }
 0x1bf   :  { %v2042_v4 = vadd.f32 %v2041_v20, %v1890_v10 }
 0x1c0   :  { %v2706_v25 = vpop.f32.mrf.mxu1 }
 0x1d7   :  { %v2145_v42 = vpop.f32.mrf.mxu0 }
 0x1d8   :  { %v2146_v49 = vadd.f32 %v2145_v42, %v2042_v4 }
 0x1d9   :  { %v2741_v50 = vpop.f32.mrf.mxu0 }
 0x1e0   :  { %v2234_v32 = vpop.f32.mrf.mxu1 }
 0x1e1   :  { %v2235_v48 = vadd.f32 %v2234_v32, %v2146_v49 }
 0x1e2   :  { %v2776_v13 = vpop.f32.mrf.mxu1 }
 0x1f9   :  { %v2353_v23 = vpop.f32.mrf.mxu0 }
 0x1fa   :  { %v2354_v33 = vadd.f32 %v2353_v23, %v2235_v48 }
 0x1fb   :  { %v2811_v9 = vpop.f32.mrf.mxu0 }
 0x201   :  { %v2440_v22 = vpop.f32.mrf.mxu1 }
 0x202   :  { %v2441_v53 = vadd.f32 %v2440_v22, %v2354_v33 }
 0x203   :  { %v2846_v30 = vpop.f32.mrf.mxu1 }
 0x204   :  { %v2485_v54 = vcombine.high %v2441_v53, %v2441_v53  ;;  %v2492_v18 = vrot.slane %v2441_v53, %v2458_v31 }
 0x206   :  { %v2499_v44 = vrot.slane %v2485_v54, %v2458_v31  ;;  %v2500_v17 = vcombine.high %v2492_v18, %v2492_v18  ;;  %2512 = vst.msk [vmem:[#allocation2 + $0x8] sm:$0x3] %vm2511_vm1, %v2492_v18 }
 0x208   :  { %v2501_v40 = vcombine.high %v2499_v44, %v2499_v44  ;;  %2514 = vst.msk [vmem:[#allocation2 + $0x12] sm:$0x3] %vm2511_vm1, %v2500_v17  ;;  %2516 = vst.msk [vmem:[#allocation2 + $0x1c] sm:$0x3] %vm2511_vm1, %v2499_v44 }
 0x20a   :  { %2518 = vst.msk [vmem:[#allocation2 + $0x26] sm:$0x3] %vm2511_vm1, %v2501_v40 }
 0x20b   :  { %2523 = vsyncadd [#allocation3], 480  ;;  %s2878_s1 = smov [#allocation2]  }
 0x20c   :  { %s2524_s27 = sshll.u32 %s2878_s1, 4  ;;  %s2525_s27 = int_to_ptr.vmem [resolvable:$true] %s2524_s27 }
 0x20d   :  { %s2853_s28 = scalar_lea.vmem %s2525_s27, 160  ;;  %s2857_s29 = scalar_lea.vmem %s2525_s27, 640 }
 0x20e   :  { %p2854_p0 = scmp.ne.s32.totalorder %s2525_s27, %s2853_s28  ;;  %p2858_p1 = scmp.lt.s32.totalorder %s2525_s27, %s2525_s27 }
 0x20f   :  { %p2859_p2 = scmp.lt.s32.totalorder %s2857_s29, %s2853_s28 }
 0x211   :  { %p2860_p3 = por %p2859_p2, %p2858_p1 }
 0x213   :  { %p2861_p4 = pnand %p2860_p3, %p2854_p0 }
 0x215   :  { %2864 = shalt.err (!%p2861_p4)
}
 0x216   :  { %s2879_s30 = smov 160   ;;  %s2880_s3 = smov 10  }
 0x217   :  { %2530 = dma.vmem_to_hbm [thread:$0]  %s2525_s27, 160, %s4637_s2, [#allocation3], %s2879_s30, %s2879_s30, %s2880_s3  }
 0x218   :  { %2873 = dma.done.wait [#allocation3], 640  }
 0x219   :  { %2874 = vsyncadd [#allocation3], 4294966656 }
 0x21a   :  { %2534 = vsyncpa [#allocation3], 1 }

</bundles_post_ra>
